<compile_context>
chip_gen: v7x
topology: tpu7x:2x2x1
jax: 0.10.0
libtpu: 0.0.40
codegen_flags: <defaults>
</compile_context>

<pallas_src>
import functools

import jax
import jax.numpy as jnp
from jax import lax
from jax.experimental import pallas as pl
from jax.experimental.pallas import tpu as pltpu


def _bf16(x):
    return x.astype(jnp.bfloat16)


def _mm(a, b):
    # MXU matmul: bf16 operands, f32 accumulation.
    return jnp.dot(_bf16(a), _bf16(b), preferred_element_type=jnp.float32)


# ----------------------------------------------------------------------------
# Fused forward kernel (one grid step == one graph)
# ----------------------------------------------------------------------------
def _fused_memory_gnn_kernel(
        x_ref, a_ref, mem_ref,
        enc_w_ref, enc_b_ref, pre_w_ref, pre_b_ref,
        wc_ref, bc_ref, wq_ref, wk_ref, wv_ref, wo_ref, wm_ref, ww_ref,
        head_w_ref, head_b_ref,
        out_ref,
        *, n_layers, nb_heads, head_dim):
    scale = head_dim ** -0.5

    # Cast the adjacency once (hoisted out of the layer loop).
    a_bf = _bf16(a_ref[...])                                    # [N, N]

    # --- encoder: Linear(dim_in -> dim_inner) + ReLU ---
    h = jnp.maximum(_mm(x_ref[...], enc_w_ref[...]) + enc_b_ref[...], 0.0)
    # --- pre_mp: Linear(dim_inner -> dim_inner) + ReLU ---
    h = jnp.maximum(_mm(h, pre_w_ref[...]) + pre_b_ref[...], 0.0)

    mem = mem_ref[...]                                          # [S, E] f32

    # Static unroll over layers; h and mem stay resident in VMEM/vregs.
    for l in range(n_layers):
        h_bf = _bf16(h)                                         # cast once/layer
        mem_bf = _bf16(mem)

        # --- GCN aggregation: H = A_norm @ (h @ W_c) + b_c ---
        hw = jnp.dot(h_bf, wc_ref[l], preferred_element_type=jnp.float32)
        h_gcn = jnp.dot(a_bf, _bf16(hw),
                        preferred_element_type=jnp.float32) + bc_ref[l]

        # --- memory read: multi-head attention of nodes over memory slots ---
        q_bf = _bf16(jnp.dot(h_bf, wq_ref[l],
                             preferred_element_type=jnp.float32))   # [N, H*Dh]
        k_bf = _bf16(jnp.dot(mem_bf, wk_ref[l],
                             preferred_element_type=jnp.float32))   # [S, H*Dh]
        v_bf = _bf16(jnp.dot(mem_bf, wv_ref[l],
                             preferred_element_type=jnp.float32))   # [S, H*Dh]

        head_outs = []
        for hh in range(nb_heads):
            lo = hh * head_dim
            qh = q_bf[:, lo:lo + head_dim]
            kh = k_bf[:, lo:lo + head_dim]
            vh = v_bf[:, lo:lo + head_dim]
            # Contract last axes directly (no explicit kh.T relayout).
            s = lax.dot_general(
                qh, kh,
                dimension_numbers=(((1,), (1,)), ((), ())),
                preferred_element_type=jnp.float32) * scale     # [N, S]
            s = s - jnp.max(s, axis=-1, keepdims=True)
            p = jnp.exp(s)
            p = p * pl.reciprocal(jnp.sum(p, axis=-1, keepdims=True),
                                  approx=True)
            head_outs.append(jnp.dot(_bf16(p), vh,
                                     preferred_element_type=jnp.float32))
        # Keep head outputs in vregs; one lane-dense [N,H*Dh]@[H*Dh,O] matmul.
        read = jnp.concatenate(head_outs, axis=-1)              # [N, H*Dh]
        msg = _mm(read, wo_ref[l])                              # [N, O]

        # --- combine GCN message with memory message ---
        h_new = jnp.maximum(h_gcn + _mm(msg, wm_ref[l]), 0.0)   # [N, D]

        # --- memory write-back from the layer input (mean commutes with the
        #     linear map: mean(h @ W) == mean(h) @ W) ---
        upd = _mm(jnp.mean(h, axis=0, keepdims=True), ww_ref[l])    # [1, E]
        mem = jnp.tanh(mem + upd)

        h = h_new

    # --- post_mp head: global mean pool + Linear(dim_inner -> dim_out) ---
    g = jnp.mean(h, axis=0, keepdims=True)                      # [1, D]
    out_ref[...] = (_mm(g, head_w_ref[...]) + head_b_ref[...]).astype(
        out_ref.dtype)


# ----------------------------------------------------------------------------
# Wrapper
# ----------------------------------------------------------------------------
def _const_spec(arr):
    """Full-array block with a constant index_map -> weight stays resident."""
    zeros = (0,) * arr.ndim
    return pl.BlockSpec(arr.shape, lambda b, _z=zeros: _z)


def memory_gnn_forward(params, x, a_norm, *, nb_heads, head_dim):
    """x: [B, N, dim_in], a_norm: [B, N, N] -> [B, dim_out]."""
    batch, n, _ = x.shape
    n_layers = params["layers"]["w_conv"].shape[0]
    dim_out = params["head"]["w"].shape[1]
    L = params["layers"]

    weights = (params["mem_init"],
               params["enc"]["w"], params["enc"]["b"],
               params["pre"]["w"], params["pre"]["b"],
               L["w_conv"], L["b_conv"], L["w_q"], L["w_k"], L["w_v"],
               L["w_o"], L["w_m"], L["w_write"],
               params["head"]["w"], params["head"]["b"])

    kernel = functools.partial(_fused_memory_gnn_kernel,
                               n_layers=n_layers, nb_heads=nb_heads,
                               head_dim=head_dim)

    grid_spec = pltpu.PrefetchScalarGridSpec(
        num_scalar_prefetch=0,
        grid=(batch,),
        in_specs=[
            pl.BlockSpec((None, n, x.shape[2]), lambda b: (b, 0, 0)),
            pl.BlockSpec((None, n, n), lambda b: (b, 0, 0)),
        ] + [_const_spec(w) for w in weights],
        out_specs=pl.BlockSpec((None, 1, dim_out), lambda b: (b, 0, 0)),
    )

    out = pl.pallas_call(
        kernel,
        out_shape=jax.ShapeDtypeStruct((batch, 1, dim_out), jnp.float32),
        grid_spec=grid_spec,
        compiler_params=pltpu.CompilerParams(
            dimension_semantics=("parallel",)),
    )(x, a_norm, *weights)
    return out.reshape(batch, dim_out)


# ----------------------------------------------------------------------------
# Parameter setup (plain JAX)
# ----------------------------------------------------------------------------
def _dense_init(key, fan_in, shape, dtype=jnp.bfloat16):
    w = jax.random.normal(key, shape, jnp.float32) / jnp.sqrt(jnp.float32(fan_in))
    return w.astype(dtype)


def init_params(key, *, dim_in, dim_inner, dim_out, mem_size, emb_size,
                nb_heads, head_dim, mem_out_size, n_layers):
    hd = nb_heads * head_dim
    keys = iter(jax.random.split(key, 4 + 7 * n_layers))
    params = {
        "enc": {"w": _dense_init(next(keys), dim_in, (dim_in, dim_inner)),
                "b": jnp.zeros((1, dim_inner), jnp.float32)},
        "pre": {"w": _dense_init(next(keys), dim_inner, (dim_inner, dim_inner)),
                "b": jnp.zeros((1, dim_inner), jnp.float32)},
        "mem_init": _dense_init(next(keys), emb_size, (mem_size, emb_size),
                                jnp.float32),
        "head": {"w": _dense_init(next(keys), dim_inner, (dim_inner, dim_out)),
                 "b": jnp.zeros((1, dim_out), jnp.float32)},
    }

    def stack(fan_in, shape):
        return jnp.stack([_dense_init(next(keys), fan_in, shape)
                          for _ in range(n_layers)])

    params["layers"] = {
        "w_conv": stack(dim_inner, (dim_inner, dim_inner)),
        "b_conv": jnp.zeros((n_layers, 1, dim_inner), jnp.float32),
        "w_q": stack(dim_inner, (dim_inner, hd)),
        "w_k": stack(emb_size, (emb_size, hd)),
        "w_v": stack(emb_size, (emb_size, hd)),
        "w_o": stack(hd, (hd, mem_out_size)),
        "w_m": stack(mem_out_size, (mem_out_size, dim_inner)),
        "w_write": stack(dim_inner, (dim_inner, emb_size)),
    }
    return params


if __name__ == "__main__":
    # Lane-dense internal dims (128), small node count, small graph batch.
    B, N, DIM_IN, DIM_INNER, DIM_OUT = 4, 16, 8, 128, 4
    MEM_SIZE, EMB_SIZE, NB_HEADS, HEAD_DIM = 8, 128, 4, 32
    MEM_OUT_SIZE, N_LAYERS = 128, 2

    root = jax.random.PRNGKey(0)
    k_x, k_p = jax.random.split(root)

    # node features, one set per graph
    x = jax.random.normal(k_x, (B, N, DIM_IN), jnp.float32)

    # ring graph with self-loops, symmetric-normalized (constant degree 3),
    # replicated per graph in the batch
    adj = jnp.eye(N, dtype=jnp.float32)
    adj = adj + jnp.roll(jnp.eye(N, dtype=jnp.float32), 1, axis=1)
    adj = adj + jnp.roll(jnp.eye(N, dtype=jnp.float32), -1, axis=1)
    a_norm = jnp.tile((adj / 3.0)[None], (B, 1, 1))

    params = init_params(
        k_p, dim_in=DIM_IN, dim_inner=DIM_INNER, dim_out=DIM_OUT,
        mem_size=MEM_SIZE, emb_size=EMB_SIZE, nb_heads=NB_HEADS,
        head_dim=HEAD_DIM, mem_out_size=MEM_OUT_SIZE, n_layers=N_LAYERS)

    out = memory_gnn_forward(params, x, a_norm,
                             nb_heads=NB_HEADS, head_dim=HEAD_DIM)
    out = jax.block_until_ready(out)
    assert out.shape == (B, DIM_OUT) and out.dtype == jnp.float32
    print("KERNEL_OK")
</pallas_src>

<mosaic_0001>
module attributes {stable_mosaic.version = 11 : i64} {
  func.func @_fused_memory_gnn_kernel(%arg0: i32, %arg1: memref<1x16x8xf32, #tpu.memory_space<vmem>>, %arg2: memref<1x16x16xf32, #tpu.memory_space<vmem>>, %arg3: memref<8x128xf32, #tpu.memory_space<vmem>>, %arg4: memref<8x128xbf16, #tpu.memory_space<vmem>>, %arg5: memref<1x128xf32, #tpu.memory_space<vmem>>, %arg6: memref<128x128xbf16, #tpu.memory_space<vmem>>, %arg7: memref<1x128xf32, #tpu.memory_space<vmem>>, %arg8: memref<2x128x128xbf16, #tpu.memory_space<vmem>>, %arg9: memref<2x1x128xf32, #tpu.memory_space<vmem>>, %arg10: memref<2x128x128xbf16, #tpu.memory_space<vmem>>, %arg11: memref<2x128x128xbf16, #tpu.memory_space<vmem>>, %arg12: memref<2x128x128xbf16, #tpu.memory_space<vmem>>, %arg13: memref<2x128x128xbf16, #tpu.memory_space<vmem>>, %arg14: memref<2x128x128xbf16, #tpu.memory_space<vmem>>, %arg15: memref<2x128x128xbf16, #tpu.memory_space<vmem>>, %arg16: memref<128x4xbf16, #tpu.memory_space<vmem>>, %arg17: memref<1x4xf32, #tpu.memory_space<vmem>>, %arg18: memref<1x1x4xf32, #tpu.memory_space<vmem>>) attributes {dimension_semantics = [#tpu.dimension_semantics<parallel>], iteration_bounds = array<i64: 4>, scalar_prefetch = 0 : i64, scratch_operands = 0 : i64, tpu.core_type = #tpu.core_type<tc>, window_params = [{transform_indices = @transform_0, window_bounds = array<i64: 1, 16, 8>}, {transform_indices = @transform_1, window_bounds = array<i64: 1, 16, 16>}, {pipeline_mode = #tpu.pipeline_mode<synchronous>, transform_indices = @transform_2, window_bounds = array<i64: 8, 128>}, {pipeline_mode = #tpu.pipeline_mode<synchronous>, transform_indices = @transform_3, window_bounds = array<i64: 8, 128>}, {pipeline_mode = #tpu.pipeline_mode<synchronous>, transform_indices = @transform_4, window_bounds = array<i64: 1, 128>}, {pipeline_mode = #tpu.pipeline_mode<synchronous>, transform_indices = @transform_5, window_bounds = array<i64: 128, 128>}, {pipeline_mode = #tpu.pipeline_mode<synchronous>, transform_indices = @transform_6, window_bounds = array<i64: 1, 128>}, {pipeline_mode = #tpu.pipeline_mode<synchronous>, transform_indices = @transform_7, window_bounds = array<i64: 2, 128, 128>}, {pipeline_mode = #tpu.pipeline_mode<synchronous>, transform_indices = @transform_8, window_bounds = array<i64: 2, 1, 128>}, {pipeline_mode = #tpu.pipeline_mode<synchronous>, transform_indices = @transform_9, window_bounds = array<i64: 2, 128, 128>}, {pipeline_mode = #tpu.pipeline_mode<synchronous>, transform_indices = @transform_10, window_bounds = array<i64: 2, 128, 128>}, {pipeline_mode = #tpu.pipeline_mode<synchronous>, transform_indices = @transform_11, window_bounds = array<i64: 2, 128, 128>}, {pipeline_mode = #tpu.pipeline_mode<synchronous>, transform_indices = @transform_12, window_bounds = array<i64: 2, 128, 128>}, {pipeline_mode = #tpu.pipeline_mode<synchronous>, transform_indices = @transform_13, window_bounds = array<i64: 2, 128, 128>}, {pipeline_mode = #tpu.pipeline_mode<synchronous>, transform_indices = @transform_14, window_bounds = array<i64: 2, 128, 128>}, {pipeline_mode = #tpu.pipeline_mode<synchronous>, transform_indices = @transform_15, window_bounds = array<i64: 128, 4>}, {pipeline_mode = #tpu.pipeline_mode<synchronous>, transform_indices = @transform_16, window_bounds = array<i64: 1, 4>}, {transform_indices = @transform_17, window_bounds = array<i64: 1, 1, 4>}]} {
    %c0 = arith.constant 0 : index
    %c0_0 = arith.constant 0 : index
    %c0_1 = arith.constant 0 : index
    %0 = vector.load %arg2[%c0, %c0_0, %c0_1] : memref<1x16x16xf32, #tpu.memory_space<vmem>>, vector<1x16x16xf32>
    %1 = vector.shape_cast %0 : vector<1x16x16xf32> to vector<16x16xf32>
    %2 = arith.truncf %1 : vector<16x16xf32> to vector<16x16xbf16>
    %c0_2 = arith.constant 0 : index
    %c0_3 = arith.constant 0 : index
    %c0_4 = arith.constant 0 : index
    %3 = vector.load %arg1[%c0_2, %c0_3, %c0_4] : memref<1x16x8xf32, #tpu.memory_space<vmem>>, vector<1x16x8xf32>
    %4 = vector.shape_cast %3 : vector<1x16x8xf32> to vector<16x8xf32>
    %c0_5 = arith.constant 0 : index
    %c0_6 = arith.constant 0 : index
    %5 = vector.load %arg4[%c0_5, %c0_6] : memref<8x128xbf16, #tpu.memory_space<vmem>>, vector<8x128xbf16>
    %6 = arith.truncf %4 : vector<16x8xf32> to vector<16x8xbf16>
    %cst = arith.constant dense<0.000000e+00> : vector<16x128xf32>
    %7 = tpu.matmul %6, %5, %cst {dimension_numbers = #tpu.dot_dimension_numbers<[1], [0], [0], [1], [0, 0, 1, 1], [], []>} : vector<16x8xbf16>, vector<8x128xbf16>, vector<16x128xf32> -> vector<16x128xf32>
    %c0_7 = arith.constant 0 : index
    %c0_8 = arith.constant 0 : index
    %8 = vector.load %arg5[%c0_7, %c0_8] : memref<1x128xf32, #tpu.memory_space<vmem>>, vector<1x128xf32>
    %9 = vector.broadcast %8 : vector<1x128xf32> to vector<16x128xf32>
    %10 = arith.addf %7, %9 : vector<16x128xf32>
    %cst_9 = arith.constant 0.000000e+00 : f32
    %11 = vector.broadcast %cst_9 : f32 to vector<16x128xf32>
    %12 = arith.maximumf %10, %11 : vector<16x128xf32>
    %c0_10 = arith.constant 0 : index
    %c0_11 = arith.constant 0 : index
    %13 = vector.load %arg6[%c0_10, %c0_11] : memref<128x128xbf16, #tpu.memory_space<vmem>>, vector<128x128xbf16>
    %14 = arith.truncf %12 : vector<16x128xf32> to vector<16x128xbf16>
    %cst_12 = arith.constant dense<0.000000e+00> : vector<16x128xf32>
    %15 = tpu.matmul %14, %13, %cst_12 {dimension_numbers = #tpu.dot_dimension_numbers<[1], [0], [0], [1], [0, 0, 1, 1], [], []>} : vector<16x128xbf16>, vector<128x128xbf16>, vector<16x128xf32> -> vector<16x128xf32>
    %c0_13 = arith.constant 0 : index
    %c0_14 = arith.constant 0 : index
    %16 = vector.load %arg7[%c0_13, %c0_14] : memref<1x128xf32, #tpu.memory_space<vmem>>, vector<1x128xf32>
    %17 = vector.broadcast %16 : vector<1x128xf32> to vector<16x128xf32>
    %18 = arith.addf %15, %17 : vector<16x128xf32>
    %cst_15 = arith.constant 0.000000e+00 : f32
    %19 = vector.broadcast %cst_15 : f32 to vector<16x128xf32>
    %20 = arith.maximumf %18, %19 : vector<16x128xf32>
    %c0_16 = arith.constant 0 : index
    %c0_17 = arith.constant 0 : index
    %21 = vector.load %arg3[%c0_16, %c0_17] : memref<8x128xf32, #tpu.memory_space<vmem>>, vector<8x128xf32>
    %22 = arith.truncf %20 : vector<16x128xf32> to vector<16x128xbf16>
    %23 = arith.truncf %21 : vector<8x128xf32> to vector<8x128xbf16>
    %c0_18 = arith.constant 0 : index
    %c0_19 = arith.constant 0 : index
    %c0_20 = arith.constant 0 : index
    %24 = vector.load %arg8[%c0_18, %c0_19, %c0_20] : memref<2x128x128xbf16, #tpu.memory_space<vmem>>, vector<1x128x128xbf16>
    %25 = vector.shape_cast %24 : vector<1x128x128xbf16> to vector<128x128xbf16>
    %cst_21 = arith.constant dense<0.000000e+00> : vector<16x128xf32>
    %26 = tpu.matmul %22, %25, %cst_21 {dimension_numbers = #tpu.dot_dimension_numbers<[1], [0], [0], [1], [0, 0, 1, 1], [], []>} : vector<16x128xbf16>, vector<128x128xbf16>, vector<16x128xf32> -> vector<16x128xf32>
    %27 = arith.truncf %26 : vector<16x128xf32> to vector<16x128xbf16>
    %cst_22 = arith.constant dense<0.000000e+00> : vector<16x128xf32>
    %28 = tpu.matmul %2, %27, %cst_22 {dimension_numbers = #tpu.dot_dimension_numbers<[1], [0], [0], [1], [0, 0, 1, 1], [], []>} : vector<16x16xbf16>, vector<16x128xbf16>, vector<16x128xf32> -> vector<16x128xf32>
    %c0_23 = arith.constant 0 : index
    %c0_24 = arith.constant 0 : index
    %c0_25 = arith.constant 0 : index
    %29 = vector.load %arg9[%c0_23, %c0_24, %c0_25] : memref<2x1x128xf32, #tpu.memory_space<vmem>>, vector<1x1x128xf32>
    %30 = vector.shape_cast %29 : vector<1x1x128xf32> to vector<1x128xf32>
    %31 = vector.broadcast %30 : vector<1x128xf32> to vector<16x128xf32>
    %32 = arith.addf %28, %31 : vector<16x128xf32>
    %c0_26 = arith.constant 0 : index
    %c0_27 = arith.constant 0 : index
    %c0_28 = arith.constant 0 : index
    %33 = vector.load %arg10[%c0_26, %c0_27, %c0_28] : memref<2x128x128xbf16, #tpu.memory_space<vmem>>, vector<1x128x128xbf16>
    %34 = vector.shape_cast %33 : vector<1x128x128xbf16> to vector<128x128xbf16>
    %cst_29 = arith.constant dense<0.000000e+00> : vector<16x128xf32>
    %35 = tpu.matmul %22, %34, %cst_29 {dimension_numbers = #tpu.dot_dimension_numbers<[1], [0], [0], [1], [0, 0, 1, 1], [], []>} : vector<16x128xbf16>, vector<128x128xbf16>, vector<16x128xf32> -> vector<16x128xf32>
    %36 = arith.truncf %35 : vector<16x128xf32> to vector<16x128xbf16>
    %c0_30 = arith.constant 0 : index
    %c0_31 = arith.constant 0 : index
    %c0_32 = arith.constant 0 : index
    %37 = vector.load %arg11[%c0_30, %c0_31, %c0_32] : memref<2x128x128xbf16, #tpu.memory_space<vmem>>, vector<1x128x128xbf16>
    %38 = vector.shape_cast %37 : vector<1x128x128xbf16> to vector<128x128xbf16>
    %cst_33 = arith.constant dense<0.000000e+00> : vector<8x128xf32>
    %39 = tpu.matmul %23, %38, %cst_33 {dimension_numbers = #tpu.dot_dimension_numbers<[1], [0], [0], [1], [0, 0, 1, 1], [], []>} : vector<8x128xbf16>, vector<128x128xbf16>, vector<8x128xf32> -> vector<8x128xf32>
    %40 = arith.truncf %39 : vector<8x128xf32> to vector<8x128xbf16>
    %c0_34 = arith.constant 0 : index
    %c0_35 = arith.constant 0 : index
    %c0_36 = arith.constant 0 : index
    %41 = vector.load %arg12[%c0_34, %c0_35, %c0_36] : memref<2x128x128xbf16, #tpu.memory_space<vmem>>, vector<1x128x128xbf16>
    %42 = vector.shape_cast %41 : vector<1x128x128xbf16> to vector<128x128xbf16>
    %cst_37 = arith.constant dense<0.000000e+00> : vector<8x128xf32>
    %43 = tpu.matmul %23, %42, %cst_37 {dimension_numbers = #tpu.dot_dimension_numbers<[1], [0], [0], [1], [0, 0, 1, 1], [], []>} : vector<8x128xbf16>, vector<128x128xbf16>, vector<8x128xf32> -> vector<8x128xf32>
    %44 = arith.truncf %43 : vector<8x128xf32> to vector<8x128xbf16>
    %45 = vector.extract_strided_slice %36 {offsets = [0, 0], sizes = [16, 32], strides = [1, 1]} : vector<16x128xbf16> to vector<16x32xbf16>
    %46 = vector.extract_strided_slice %40 {offsets = [0, 0], sizes = [8, 32], strides = [1, 1]} : vector<8x128xbf16> to vector<8x32xbf16>
    %47 = vector.extract_strided_slice %44 {offsets = [0, 0], sizes = [8, 32], strides = [1, 1]} : vector<8x128xbf16> to vector<8x32xbf16>
    %cst_38 = arith.constant dense<0.000000e+00> : vector<16x8xf32>
    %48 = tpu.matmul %45, %46, %cst_38 {dimension_numbers = #tpu.dot_dimension_numbers<[1], [1], [0], [0], [0, 0, 1, 0], [], []>} : vector<16x32xbf16>, vector<8x32xbf16>, vector<16x8xf32> -> vector<16x8xf32>
    %cst_39 = arith.constant 0.176776692 : f32
    %49 = vector.broadcast %cst_39 : f32 to vector<16x8xf32>
    %50 = arith.mulf %48, %49 : vector<16x8xf32>
    %cst_40 = arith.constant dense<0xFF800000> : vector<16xf32>
    %51 = vector.multi_reduction <maximumf>, %50, %cst_40 [1] : vector<16x8xf32> to vector<16xf32>
    %52 = vector.shape_cast %51 : vector<16xf32> to vector<16x1xf32>
    %53 = vector.broadcast %52 : vector<16x1xf32> to vector<16x8xf32>
    %54 = arith.subf %50, %53 : vector<16x8xf32>
    %55 = math.exp %54 : vector<16x8xf32>
    %cst_41 = arith.constant dense<0.000000e+00> : vector<16xf32>
    %56 = vector.multi_reduction <add>, %55, %cst_41 [1] : vector<16x8xf32> to vector<16xf32>
    %57 = vector.shape_cast %56 : vector<16xf32> to vector<16x1xf32>
    %58 = tpu.reciprocal %57 {approx = true} : vector<16x1xf32> -> vector<16x1xf32>
    %59 = vector.broadcast %58 : vector<16x1xf32> to vector<16x8xf32>
    %60 = arith.mulf %55, %59 : vector<16x8xf32>
    %61 = arith.truncf %60 : vector<16x8xf32> to vector<16x8xbf16>
    %cst_42 = arith.constant dense<0.000000e+00> : vector<16x32xf32>
    %62 = tpu.matmul %61, %47, %cst_42 {dimension_numbers = #tpu.dot_dimension_numbers<[1], [0], [0], [1], [0, 0, 1, 1], [], []>} : vector<16x8xbf16>, vector<8x32xbf16>, vector<16x32xf32> -> vector<16x32xf32>
    %63 = vector.extract_strided_slice %36 {offsets = [0, 32], sizes = [16, 32], strides = [1, 1]} : vector<16x128xbf16> to vector<16x32xbf16>
    %64 = vector.extract_strided_slice %40 {offsets = [0, 32], sizes = [8, 32], strides = [1, 1]} : vector<8x128xbf16> to vector<8x32xbf16>
    %65 = vector.extract_strided_slice %44 {offsets = [0, 32], sizes = [8, 32], strides = [1, 1]} : vector<8x128xbf16> to vector<8x32xbf16>
    %cst_43 = arith.constant dense<0.000000e+00> : vector<16x8xf32>
    %66 = tpu.matmul %63, %64, %cst_43 {dimension_numbers = #tpu.dot_dimension_numbers<[1], [1], [0], [0], [0, 0, 1, 0], [], []>} : vector<16x32xbf16>, vector<8x32xbf16>, vector<16x8xf32> -> vector<16x8xf32>
    %cst_44 = arith.constant 0.176776692 : f32
    %67 = vector.broadcast %cst_44 : f32 to vector<16x8xf32>
    %68 = arith.mulf %66, %67 : vector<16x8xf32>
    %cst_45 = arith.constant dense<0xFF800000> : vector<16xf32>
    %69 = vector.multi_reduction <maximumf>, %68, %cst_45 [1] : vector<16x8xf32> to vector<16xf32>
    %70 = vector.shape_cast %69 : vector<16xf32> to vector<16x1xf32>
    %71 = vector.broadcast %70 : vector<16x1xf32> to vector<16x8xf32>
    %72 = arith.subf %68, %71 : vector<16x8xf32>
    %73 = math.exp %72 : vector<16x8xf32>
    %cst_46 = arith.constant dense<0.000000e+00> : vector<16xf32>
    %74 = vector.multi_reduction <add>, %73, %cst_46 [1] : vector<16x8xf32> to vector<16xf32>
    %75 = vector.shape_cast %74 : vector<16xf32> to vector<16x1xf32>
    %76 = tpu.reciprocal %75 {approx = true} : vector<16x1xf32> -> vector<16x1xf32>
    %77 = vector.broadcast %76 : vector<16x1xf32> to vector<16x8xf32>
    %78 = arith.mulf %73, %77 : vector<16x8xf32>
    %79 = arith.truncf %78 : vector<16x8xf32> to vector<16x8xbf16>
    %cst_47 = arith.constant dense<0.000000e+00> : vector<16x32xf32>
    %80 = tpu.matmul %79, %65, %cst_47 {dimension_numbers = #tpu.dot_dimension_numbers<[1], [0], [0], [1], [0, 0, 1, 1], [], []>} : vector<16x8xbf16>, vector<8x32xbf16>, vector<16x32xf32> -> vector<16x32xf32>
    %81 = vector.extract_strided_slice %36 {offsets = [0, 64], sizes = [16, 32], strides = [1, 1]} : vector<16x128xbf16> to vector<16x32xbf16>
    %82 = vector.extract_strided_slice %40 {offsets = [0, 64], sizes = [8, 32], strides = [1, 1]} : vector<8x128xbf16> to vector<8x32xbf16>
    %83 = vector.extract_strided_slice %44 {offsets = [0, 64], sizes = [8, 32], strides = [1, 1]} : vector<8x128xbf16> to vector<8x32xbf16>
    %cst_48 = arith.constant dense<0.000000e+00> : vector<16x8xf32>
    %84 = tpu.matmul %81, %82, %cst_48 {dimension_numbers = #tpu.dot_dimension_numbers<[1], [1], [0], [0], [0, 0, 1, 0], [], []>} : vector<16x32xbf16>, vector<8x32xbf16>, vector<16x8xf32> -> vector<16x8xf32>
    %cst_49 = arith.constant 0.176776692 : f32
    %85 = vector.broadcast %cst_49 : f32 to vector<16x8xf32>
    %86 = arith.mulf %84, %85 : vector<16x8xf32>
    %cst_50 = arith.constant dense<0xFF800000> : vector<16xf32>
    %87 = vector.multi_reduction <maximumf>, %86, %cst_50 [1] : vector<16x8xf32> to vector<16xf32>
    %88 = vector.shape_cast %87 : vector<16xf32> to vector<16x1xf32>
    %89 = vector.broadcast %88 : vector<16x1xf32> to vector<16x8xf32>
    %90 = arith.subf %86, %89 : vector<16x8xf32>
    %91 = math.exp %90 : vector<16x8xf32>
    %cst_51 = arith.constant dense<0.000000e+00> : vector<16xf32>
    %92 = vector.multi_reduction <add>, %91, %cst_51 [1] : vector<16x8xf32> to vector<16xf32>
    %93 = vector.shape_cast %92 : vector<16xf32> to vector<16x1xf32>
    %94 = tpu.reciprocal %93 {approx = true} : vector<16x1xf32> -> vector<16x1xf32>
    %95 = vector.broadcast %94 : vector<16x1xf32> to vector<16x8xf32>
    %96 = arith.mulf %91, %95 : vector<16x8xf32>
    %97 = arith.truncf %96 : vector<16x8xf32> to vector<16x8xbf16>
    %cst_52 = arith.constant dense<0.000000e+00> : vector<16x32xf32>
    %98 = tpu.matmul %97, %83, %cst_52 {dimension_numbers = #tpu.dot_dimension_numbers<[1], [0], [0], [1], [0, 0, 1, 1], [], []>} : vector<16x8xbf16>, vector<8x32xbf16>, vector<16x32xf32> -> vector<16x32xf32>
    %99 = vector.extract_strided_slice %36 {offsets = [0, 96], sizes = [16, 32], strides = [1, 1]} : vector<16x128xbf16> to vector<16x32xbf16>
    %100 = vector.extract_strided_slice %40 {offsets = [0, 96], sizes = [8, 32], strides = [1, 1]} : vector<8x128xbf16> to vector<8x32xbf16>
    %101 = vector.extract_strided_slice %44 {offsets = [0, 96], sizes = [8, 32], strides = [1, 1]} : vector<8x128xbf16> to vector<8x32xbf16>
    %cst_53 = arith.constant dense<0.000000e+00> : vector<16x8xf32>
    %102 = tpu.matmul %99, %100, %cst_53 {dimension_numbers = #tpu.dot_dimension_numbers<[1], [1], [0], [0], [0, 0, 1, 0], [], []>} : vector<16x32xbf16>, vector<8x32xbf16>, vector<16x8xf32> -> vector<16x8xf32>
    %cst_54 = arith.constant 0.176776692 : f32
    %103 = vector.broadcast %cst_54 : f32 to vector<16x8xf32>
    %104 = arith.mulf %102, %103 : vector<16x8xf32>
    %cst_55 = arith.constant dense<0xFF800000> : vector<16xf32>
    %105 = vector.multi_reduction <maximumf>, %104, %cst_55 [1] : vector<16x8xf32> to vector<16xf32>
    %106 = vector.shape_cast %105 : vector<16xf32> to vector<16x1xf32>
    %107 = vector.broadcast %106 : vector<16x1xf32> to vector<16x8xf32>
    %108 = arith.subf %104, %107 : vector<16x8xf32>
    %109 = math.exp %108 : vector<16x8xf32>
    %cst_56 = arith.constant dense<0.000000e+00> : vector<16xf32>
    %110 = vector.multi_reduction <add>, %109, %cst_56 [1] : vector<16x8xf32> to vector<16xf32>
    %111 = vector.shape_cast %110 : vector<16xf32> to vector<16x1xf32>
    %112 = tpu.reciprocal %111 {approx = true} : vector<16x1xf32> -> vector<16x1xf32>
    %113 = vector.broadcast %112 : vector<16x1xf32> to vector<16x8xf32>
    %114 = arith.mulf %109, %113 : vector<16x8xf32>
    %115 = arith.truncf %114 : vector<16x8xf32> to vector<16x8xbf16>
    %cst_57 = arith.constant dense<0.000000e+00> : vector<16x32xf32>
    %116 = tpu.matmul %115, %101, %cst_57 {dimension_numbers = #tpu.dot_dimension_numbers<[1], [0], [0], [1], [0, 0, 1, 1], [], []>} : vector<16x8xbf16>, vector<8x32xbf16>, vector<16x32xf32> -> vector<16x32xf32>
    %117 = tpu.concatenate %62, %80, %98, %116 in 1 : vector<16x32xf32>, vector<16x32xf32>, vector<16x32xf32>, vector<16x32xf32> -> vector<16x128xf32>
    %c0_58 = arith.constant 0 : index
    %c0_59 = arith.constant 0 : index
    %c0_60 = arith.constant 0 : index
    %118 = vector.load %arg13[%c0_58, %c0_59, %c0_60] : memref<2x128x128xbf16, #tpu.memory_space<vmem>>, vector<1x128x128xbf16>
    %119 = vector.shape_cast %118 : vector<1x128x128xbf16> to vector<128x128xbf16>
    %120 = arith.truncf %117 : vector<16x128xf32> to vector<16x128xbf16>
    %cst_61 = arith.constant dense<0.000000e+00> : vector<16x128xf32>
    %121 = tpu.matmul %120, %119, %cst_61 {dimension_numbers = #tpu.dot_dimension_numbers<[1], [0], [0], [1], [0, 0, 1, 1], [], []>} : vector<16x128xbf16>, vector<128x128xbf16>, vector<16x128xf32> -> vector<16x128xf32>
    %c0_62 = arith.constant 0 : index
    %c0_63 = arith.constant 0 : index
    %c0_64 = arith.constant 0 : index
    %122 = vector.load %arg14[%c0_62, %c0_63, %c0_64] : memref<2x128x128xbf16, #tpu.memory_space<vmem>>, vector<1x128x128xbf16>
    %123 = vector.shape_cast %122 : vector<1x128x128xbf16> to vector<128x128xbf16>
    %124 = arith.truncf %121 : vector<16x128xf32> to vector<16x128xbf16>
    %cst_65 = arith.constant dense<0.000000e+00> : vector<16x128xf32>
    %125 = tpu.matmul %124, %123, %cst_65 {dimension_numbers = #tpu.dot_dimension_numbers<[1], [0], [0], [1], [0, 0, 1, 1], [], []>} : vector<16x128xbf16>, vector<128x128xbf16>, vector<16x128xf32> -> vector<16x128xf32>
    %126 = arith.addf %32, %125 : vector<16x128xf32>
    %cst_66 = arith.constant 0.000000e+00 : f32
    %127 = vector.broadcast %cst_66 : f32 to vector<16x128xf32>
    %128 = arith.maximumf %126, %127 : vector<16x128xf32>
    %cst_67 = arith.constant dense<0.000000e+00> : vector<128xf32>
    %129 = vector.multi_reduction <add>, %20, %cst_67 [0] : vector<16x128xf32> to vector<128xf32>
    %130 = vector.shape_cast %129 : vector<128xf32> to vector<1x128xf32>
    %cst_68 = arith.constant 1.600000e+01 : f32
    %131 = vector.broadcast %cst_68 : f32 to vector<1x128xf32>
    %132 = arith.divf %130, %131 : vector<1x128xf32>
    %c0_69 = arith.constant 0 : index
    %c0_70 = arith.constant 0 : index
    %c0_71 = arith.constant 0 : index
    %133 = vector.load %arg15[%c0_69, %c0_70, %c0_71] : memref<2x128x128xbf16, #tpu.memory_space<vmem>>, vector<1x128x128xbf16>
    %134 = vector.shape_cast %133 : vector<1x128x128xbf16> to vector<128x128xbf16>
    %135 = arith.truncf %132 : vector<1x128xf32> to vector<1x128xbf16>
    %cst_72 = arith.constant dense<0.000000e+00> : vector<1x128xf32>
    %136 = tpu.matmul %135, %134, %cst_72 {dimension_numbers = #tpu.dot_dimension_numbers<[1], [0], [0], [1], [0, 0, 1, 1], [], []>} : vector<1x128xbf16>, vector<128x128xbf16>, vector<1x128xf32> -> vector<1x128xf32>
    %137 = vector.broadcast %136 : vector<1x128xf32> to vector<8x128xf32>
    %138 = arith.addf %21, %137 : vector<8x128xf32>
    %139 = math.tanh %138 : vector<8x128xf32>
    %140 = arith.truncf %128 : vector<16x128xf32> to vector<16x128xbf16>
    %141 = arith.truncf %139 : vector<8x128xf32> to vector<8x128xbf16>
    %c1 = arith.constant 1 : index
    %c0_73 = arith.constant 0 : index
    %c0_74 = arith.constant 0 : index
    %142 = vector.load %arg8[%c1, %c0_73, %c0_74] : memref<2x128x128xbf16, #tpu.memory_space<vmem>>, vector<1x128x128xbf16>
    %143 = vector.shape_cast %142 : vector<1x128x128xbf16> to vector<128x128xbf16>
    %cst_75 = arith.constant dense<0.000000e+00> : vector<16x128xf32>
    %144 = tpu.matmul %140, %143, %cst_75 {dimension_numbers = #tpu.dot_dimension_numbers<[1], [0], [0], [1], [0, 0, 1, 1], [], []>} : vector<16x128xbf16>, vector<128x128xbf16>, vector<16x128xf32> -> vector<16x128xf32>
    %145 = arith.truncf %144 : vector<16x128xf32> to vector<16x128xbf16>
    %cst_76 = arith.constant dense<0.000000e+00> : vector<16x128xf32>
    %146 = tpu.matmul %2, %145, %cst_76 {dimension_numbers = #tpu.dot_dimension_numbers<[1], [0], [0], [1], [0, 0, 1, 1], [], []>} : vector<16x16xbf16>, vector<16x128xbf16>, vector<16x128xf32> -> vector<16x128xf32>
    %c1_77 = arith.constant 1 : index
    %c0_78 = arith.constant 0 : index
    %c0_79 = arith.constant 0 : index
    %147 = vector.load %arg9[%c1_77, %c0_78, %c0_79] : memref<2x1x128xf32, #tpu.memory_space<vmem>>, vector<1x1x128xf32>
    %148 = vector.shape_cast %147 : vector<1x1x128xf32> to vector<1x128xf32>
    %149 = vector.broadcast %148 : vector<1x128xf32> to vector<16x128xf32>
    %150 = arith.addf %146, %149 : vector<16x128xf32>
    %c1_80 = arith.constant 1 : index
    %c0_81 = arith.constant 0 : index
    %c0_82 = arith.constant 0 : index
    %151 = vector.load %arg10[%c1_80, %c0_81, %c0_82] : memref<2x128x128xbf16, #tpu.memory_space<vmem>>, vector<1x128x128xbf16>
    %152 = vector.shape_cast %151 : vector<1x128x128xbf16> to vector<128x128xbf16>
    %cst_83 = arith.constant dense<0.000000e+00> : vector<16x128xf32>
    %153 = tpu.matmul %140, %152, %cst_83 {dimension_numbers = #tpu.dot_dimension_numbers<[1], [0], [0], [1], [0, 0, 1, 1], [], []>} : vector<16x128xbf16>, vector<128x128xbf16>, vector<16x128xf32> -> vector<16x128xf32>
    %154 = arith.truncf %153 : vector<16x128xf32> to vector<16x128xbf16>
    %c1_84 = arith.constant 1 : index
    %c0_85 = arith.constant 0 : index
    %c0_86 = arith.constant 0 : index
    %155 = vector.load %arg11[%c1_84, %c0_85, %c0_86] : memref<2x128x128xbf16, #tpu.memory_space<vmem>>, vector<1x128x128xbf16>
    %156 = vector.shape_cast %155 : vector<1x128x128xbf16> to vector<128x128xbf16>
    %cst_87 = arith.constant dense<0.000000e+00> : vector<8x128xf32>
    %157 = tpu.matmul %141, %156, %cst_87 {dimension_numbers = #tpu.dot_dimension_numbers<[1], [0], [0], [1], [0, 0, 1, 1], [], []>} : vector<8x128xbf16>, vector<128x128xbf16>, vector<8x128xf32> -> vector<8x128xf32>
    %158 = arith.truncf %157 : vector<8x128xf32> to vector<8x128xbf16>
    %c1_88 = arith.constant 1 : index
    %c0_89 = arith.constant 0 : index
    %c0_90 = arith.constant 0 : index
    %159 = vector.load %arg12[%c1_88, %c0_89, %c0_90] : memref<2x128x128xbf16, #tpu.memory_space<vmem>>, vector<1x128x128xbf16>
    %160 = vector.shape_cast %159 : vector<1x128x128xbf16> to vector<128x128xbf16>
    %cst_91 = arith.constant dense<0.000000e+00> : vector<8x128xf32>
    %161 = tpu.matmul %141, %160, %cst_91 {dimension_numbers = #tpu.dot_dimension_numbers<[1], [0], [0], [1], [0, 0, 1, 1], [], []>} : vector<8x128xbf16>, vector<128x128xbf16>, vector<8x128xf32> -> vector<8x128xf32>
    %162 = arith.truncf %161 : vector<8x128xf32> to vector<8x128xbf16>
    %163 = vector.extract_strided_slice %154 {offsets = [0, 0], sizes = [16, 32], strides = [1, 1]} : vector<16x128xbf16> to vector<16x32xbf16>
    %164 = vector.extract_strided_slice %158 {offsets = [0, 0], sizes = [8, 32], strides = [1, 1]} : vector<8x128xbf16> to vector<8x32xbf16>
    %165 = vector.extract_strided_slice %162 {offsets = [0, 0], sizes = [8, 32], strides = [1, 1]} : vector<8x128xbf16> to vector<8x32xbf16>
    %cst_92 = arith.constant dense<0.000000e+00> : vector<16x8xf32>
    %166 = tpu.matmul %163, %164, %cst_92 {dimension_numbers = #tpu.dot_dimension_numbers<[1], [1], [0], [0], [0, 0, 1, 0], [], []>} : vector<16x32xbf16>, vector<8x32xbf16>, vector<16x8xf32> -> vector<16x8xf32>
    %cst_93 = arith.constant 0.176776692 : f32
    %167 = vector.broadcast %cst_93 : f32 to vector<16x8xf32>
    %168 = arith.mulf %166, %167 : vector<16x8xf32>
    %cst_94 = arith.constant dense<0xFF800000> : vector<16xf32>
    %169 = vector.multi_reduction <maximumf>, %168, %cst_94 [1] : vector<16x8xf32> to vector<16xf32>
    %170 = vector.shape_cast %169 : vector<16xf32> to vector<16x1xf32>
    %171 = vector.broadcast %170 : vector<16x1xf32> to vector<16x8xf32>
    %172 = arith.subf %168, %171 : vector<16x8xf32>
    %173 = math.exp %172 : vector<16x8xf32>
    %cst_95 = arith.constant dense<0.000000e+00> : vector<16xf32>
    %174 = vector.multi_reduction <add>, %173, %cst_95 [1] : vector<16x8xf32> to vector<16xf32>
    %175 = vector.shape_cast %174 : vector<16xf32> to vector<16x1xf32>
    %176 = tpu.reciprocal %175 {approx = true} : vector<16x1xf32> -> vector<16x1xf32>
    %177 = vector.broadcast %176 : vector<16x1xf32> to vector<16x8xf32>
    %178 = arith.mulf %173, %177 : vector<16x8xf32>
    %179 = arith.truncf %178 : vector<16x8xf32> to vector<16x8xbf16>
    %cst_96 = arith.constant dense<0.000000e+00> : vector<16x32xf32>
    %180 = tpu.matmul %179, %165, %cst_96 {dimension_numbers = #tpu.dot_dimension_numbers<[1], [0], [0], [1], [0, 0, 1, 1], [], []>} : vector<16x8xbf16>, vector<8x32xbf16>, vector<16x32xf32> -> vector<16x32xf32>
    %181 = vector.extract_strided_slice %154 {offsets = [0, 32], sizes = [16, 32], strides = [1, 1]} : vector<16x128xbf16> to vector<16x32xbf16>
    %182 = vector.extract_strided_slice %158 {offsets = [0, 32], sizes = [8, 32], strides = [1, 1]} : vector<8x128xbf16> to vector<8x32xbf16>
    %183 = vector.extract_strided_slice %162 {offsets = [0, 32], sizes = [8, 32], strides = [1, 1]} : vector<8x128xbf16> to vector<8x32xbf16>
    %cst_97 = arith.constant dense<0.000000e+00> : vector<16x8xf32>
    %184 = tpu.matmul %181, %182, %cst_97 {dimension_numbers = #tpu.dot_dimension_numbers<[1], [1], [0], [0], [0, 0, 1, 0], [], []>} : vector<16x32xbf16>, vector<8x32xbf16>, vector<16x8xf32> -> vector<16x8xf32>
    %cst_98 = arith.constant 0.176776692 : f32
    %185 = vector.broadcast %cst_98 : f32 to vector<16x8xf32>
    %186 = arith.mulf %184, %185 : vector<16x8xf32>
    %cst_99 = arith.constant dense<0xFF800000> : vector<16xf32>
    %187 = vector.multi_reduction <maximumf>, %186, %cst_99 [1] : vector<16x8xf32> to vector<16xf32>
    %188 = vector.shape_cast %187 : vector<16xf32> to vector<16x1xf32>
    %189 = vector.broadcast %188 : vector<16x1xf32> to vector<16x8xf32>
    %190 = arith.subf %186, %189 : vector<16x8xf32>
    %191 = math.exp %190 : vector<16x8xf32>
    %cst_100 = arith.constant dense<0.000000e+00> : vector<16xf32>
    %192 = vector.multi_reduction <add>, %191, %cst_100 [1] : vector<16x8xf32> to vector<16xf32>
    %193 = vector.shape_cast %192 : vector<16xf32> to vector<16x1xf32>
    %194 = tpu.reciprocal %193 {approx = true} : vector<16x1xf32> -> vector<16x1xf32>
    %195 = vector.broadcast %194 : vector<16x1xf32> to vector<16x8xf32>
    %196 = arith.mulf %191, %195 : vector<16x8xf32>
    %197 = arith.truncf %196 : vector<16x8xf32> to vector<16x8xbf16>
    %cst_101 = arith.constant dense<0.000000e+00> : vector<16x32xf32>
    %198 = tpu.matmul %197, %183, %cst_101 {dimension_numbers = #tpu.dot_dimension_numbers<[1], [0], [0], [1], [0, 0, 1, 1], [], []>} : vector<16x8xbf16>, vector<8x32xbf16>, vector<16x32xf32> -> vector<16x32xf32>
    %199 = vector.extract_strided_slice %154 {offsets = [0, 64], sizes = [16, 32], strides = [1, 1]} : vector<16x128xbf16> to vector<16x32xbf16>
    %200 = vector.extract_strided_slice %158 {offsets = [0, 64], sizes = [8, 32], strides = [1, 1]} : vector<8x128xbf16> to vector<8x32xbf16>
    %201 = vector.extract_strided_slice %162 {offsets = [0, 64], sizes = [8, 32], strides = [1, 1]} : vector<8x128xbf16> to vector<8x32xbf16>
    %cst_102 = arith.constant dense<0.000000e+00> : vector<16x8xf32>
    %202 = tpu.matmul %199, %200, %cst_102 {dimension_numbers = #tpu.dot_dimension_numbers<[1], [1], [0], [0], [0, 0, 1, 0], [], []>} : vector<16x32xbf16>, vector<8x32xbf16>, vector<16x8xf32> -> vector<16x8xf32>
    %cst_103 = arith.constant 0.176776692 : f32
    %203 = vector.broadcast %cst_103 : f32 to vector<16x8xf32>
    %204 = arith.mulf %202, %203 : vector<16x8xf32>
    %cst_104 = arith.constant dense<0xFF800000> : vector<16xf32>
    %205 = vector.multi_reduction <maximumf>, %204, %cst_104 [1] : vector<16x8xf32> to vector<16xf32>
    %206 = vector.shape_cast %205 : vector<16xf32> to vector<16x1xf32>
    %207 = vector.broadcast %206 : vector<16x1xf32> to vector<16x8xf32>
    %208 = arith.subf %204, %207 : vector<16x8xf32>
    %209 = math.exp %208 : vector<16x8xf32>
    %cst_105 = arith.constant dense<0.000000e+00> : vector<16xf32>
    %210 = vector.multi_reduction <add>, %209, %cst_105 [1] : vector<16x8xf32> to vector<16xf32>
    %211 = vector.shape_cast %210 : vector<16xf32> to vector<16x1xf32>
    %212 = tpu.reciprocal %211 {approx = true} : vector<16x1xf32> -> vector<16x1xf32>
    %213 = vector.broadcast %212 : vector<16x1xf32> to vector<16x8xf32>
    %214 = arith.mulf %209, %213 : vector<16x8xf32>
    %215 = arith.truncf %214 : vector<16x8xf32> to vector<16x8xbf16>
    %cst_106 = arith.constant dense<0.000000e+00> : vector<16x32xf32>
    %216 = tpu.matmul %215, %201, %cst_106 {dimension_numbers = #tpu.dot_dimension_numbers<[1], [0], [0], [1], [0, 0, 1, 1], [], []>} : vector<16x8xbf16>, vector<8x32xbf16>, vector<16x32xf32> -> vector<16x32xf32>
    %217 = vector.extract_strided_slice %154 {offsets = [0, 96], sizes = [16, 32], strides = [1, 1]} : vector<16x128xbf16> to vector<16x32xbf16>
    %218 = vector.extract_strided_slice %158 {offsets = [0, 96], sizes = [8, 32], strides = [1, 1]} : vector<8x128xbf16> to vector<8x32xbf16>
    %219 = vector.extract_strided_slice %162 {offsets = [0, 96], sizes = [8, 32], strides = [1, 1]} : vector<8x128xbf16> to vector<8x32xbf16>
    %cst_107 = arith.constant dense<0.000000e+00> : vector<16x8xf32>
    %220 = tpu.matmul %217, %218, %cst_107 {dimension_numbers = #tpu.dot_dimension_numbers<[1], [1], [0], [0], [0, 0, 1, 0], [], []>} : vector<16x32xbf16>, vector<8x32xbf16>, vector<16x8xf32> -> vector<16x8xf32>
    %cst_108 = arith.constant 0.176776692 : f32
    %221 = vector.broadcast %cst_108 : f32 to vector<16x8xf32>
    %222 = arith.mulf %220, %221 : vector<16x8xf32>
    %cst_109 = arith.constant dense<0xFF800000> : vector<16xf32>
    %223 = vector.multi_reduction <maximumf>, %222, %cst_109 [1] : vector<16x8xf32> to vector<16xf32>
    %224 = vector.shape_cast %223 : vector<16xf32> to vector<16x1xf32>
    %225 = vector.broadcast %224 : vector<16x1xf32> to vector<16x8xf32>
    %226 = arith.subf %222, %225 : vector<16x8xf32>
    %227 = math.exp %226 : vector<16x8xf32>
    %cst_110 = arith.constant dense<0.000000e+00> : vector<16xf32>
    %228 = vector.multi_reduction <add>, %227, %cst_110 [1] : vector<16x8xf32> to vector<16xf32>
    %229 = vector.shape_cast %228 : vector<16xf32> to vector<16x1xf32>
    %230 = tpu.reciprocal %229 {approx = true} : vector<16x1xf32> -> vector<16x1xf32>
    %231 = vector.broadcast %230 : vector<16x1xf32> to vector<16x8xf32>
    %232 = arith.mulf %227, %231 : vector<16x8xf32>
    %233 = arith.truncf %232 : vector<16x8xf32> to vector<16x8xbf16>
    %cst_111 = arith.constant dense<0.000000e+00> : vector<16x32xf32>
    %234 = tpu.matmul %233, %219, %cst_111 {dimension_numbers = #tpu.dot_dimension_numbers<[1], [0], [0], [1], [0, 0, 1, 1], [], []>} : vector<16x8xbf16>, vector<8x32xbf16>, vector<16x32xf32> -> vector<16x32xf32>
    %235 = tpu.concatenate %180, %198, %216, %234 in 1 : vector<16x32xf32>, vector<16x32xf32>, vector<16x32xf32>, vector<16x32xf32> -> vector<16x128xf32>
    %c1_112 = arith.constant 1 : index
    %c0_113 = arith.constant 0 : index
    %c0_114 = arith.constant 0 : index
    %236 = vector.load %arg13[%c1_112, %c0_113, %c0_114] : memref<2x128x128xbf16, #tpu.memory_space<vmem>>, vector<1x128x128xbf16>
    %237 = vector.shape_cast %236 : vector<1x128x128xbf16> to vector<128x128xbf16>
    %238 = arith.truncf %235 : vector<16x128xf32> to vector<16x128xbf16>
    %cst_115 = arith.constant dense<0.000000e+00> : vector<16x128xf32>
    %239 = tpu.matmul %238, %237, %cst_115 {dimension_numbers = #tpu.dot_dimension_numbers<[1], [0], [0], [1], [0, 0, 1, 1], [], []>} : vector<16x128xbf16>, vector<128x128xbf16>, vector<16x128xf32> -> vector<16x128xf32>
    %c1_116 = arith.constant 1 : index
    %c0_117 = arith.constant 0 : index
    %c0_118 = arith.constant 0 : index
    %240 = vector.load %arg14[%c1_116, %c0_117, %c0_118] : memref<2x128x128xbf16, #tpu.memory_space<vmem>>, vector<1x128x128xbf16>
    %241 = vector.shape_cast %240 : vector<1x128x128xbf16> to vector<128x128xbf16>
    %242 = arith.truncf %239 : vector<16x128xf32> to vector<16x128xbf16>
    %cst_119 = arith.constant dense<0.000000e+00> : vector<16x128xf32>
    %243 = tpu.matmul %242, %241, %cst_119 {dimension_numbers = #tpu.dot_dimension_numbers<[1], [0], [0], [1], [0, 0, 1, 1], [], []>} : vector<16x128xbf16>, vector<128x128xbf16>, vector<16x128xf32> -> vector<16x128xf32>
    %244 = arith.addf %150, %243 : vector<16x128xf32>
    %cst_120 = arith.constant 0.000000e+00 : f32
    %245 = vector.broadcast %cst_120 : f32 to vector<16x128xf32>
    %246 = arith.maximumf %244, %245 : vector<16x128xf32>
    %cst_121 = arith.constant dense<0.000000e+00> : vector<128xf32>
    %247 = vector.multi_reduction <add>, %246, %cst_121 [0] : vector<16x128xf32> to vector<128xf32>
    %248 = vector.shape_cast %247 : vector<128xf32> to vector<1x128xf32>
    %cst_122 = arith.constant 1.600000e+01 : f32
    %249 = vector.broadcast %cst_122 : f32 to vector<1x128xf32>
    %250 = arith.divf %248, %249 : vector<1x128xf32>
    %c0_123 = arith.constant 0 : index
    %c0_124 = arith.constant 0 : index
    %251 = vector.load %arg16[%c0_123, %c0_124] : memref<128x4xbf16, #tpu.memory_space<vmem>>, vector<128x4xbf16>
    %252 = arith.truncf %250 : vector<1x128xf32> to vector<1x128xbf16>
    %cst_125 = arith.constant dense<0.000000e+00> : vector<1x4xf32>
    %253 = tpu.matmul %252, %251, %cst_125 {dimension_numbers = #tpu.dot_dimension_numbers<[1], [0], [0], [1], [0, 0, 1, 1], [], []>} : vector<1x128xbf16>, vector<128x4xbf16>, vector<1x4xf32> -> vector<1x4xf32>
    %c0_126 = arith.constant 0 : index
    %c0_127 = arith.constant 0 : index
    %254 = vector.load %arg17[%c0_126, %c0_127] : memref<1x4xf32, #tpu.memory_space<vmem>>, vector<1x4xf32>
    %255 = arith.addf %253, %254 : vector<1x4xf32>
    %c0_128 = arith.constant 0 : index
    %c0_129 = arith.constant 0 : index
    %c0_130 = arith.constant 0 : index
    %256 = vector.load %arg18[%c0_128, %c0_129, %c0_130] : memref<1x1x4xf32, #tpu.memory_space<vmem>>, vector<1x1x4xf32>
    %257 = vector.shape_cast %256 : vector<1x1x4xf32> to vector<1x4xf32>
    %258 = vector.shape_cast %255 : vector<1x4xf32> to vector<1x1x4xf32>
    tpu.vector_store %arg18[%c0_128, %c0_129, %c0_130], %258 {strides = array<i32>} : memref<1x1x4xf32, #tpu.memory_space<vmem>>, vector<1x1x4xf32>,
    return
  }
  func.func @transform_0(%arg0: i32) -> (i32, i32, i32) {
    %c0_i32 = arith.constant 0 : i32
    %c0_i32_0 = arith.constant 0 : i32
    %c0_i32_1 = arith.constant 0 : i32
    return %arg0, %c0_i32, %c0_i32_0 : i32, i32, i32
  }
  func.func @transform_1(%arg0: i32) -> (i32, i32, i32) {
    %c0_i32 = arith.constant 0 : i32
    %c0_i32_0 = arith.constant 0 : i32
    %c0_i32_1 = arith.constant 0 : i32
    return %arg0, %c0_i32, %c0_i32_0 : i32, i32, i32
  }
  func.func @transform_2(%arg0: i32) -> (i32, i32) {
    %c0_i32 = arith.constant 0 : i32
    %c0_i32_0 = arith.constant 0 : i32
    %c0_i32_1 = arith.constant 0 : i32
    return %c0_i32, %c0_i32_0 : i32, i32
  }
  func.func @transform_3(%arg0: i32) -> (i32, i32) {
    %c0_i32 = arith.constant 0 : i32
    %c0_i32_0 = arith.constant 0 : i32
    %c0_i32_1 = arith.constant 0 : i32
    return %c0_i32, %c0_i32_0 : i32, i32
  }
  func.func @transform_4(%arg0: i32) -> (i32, i32) {
    %c0_i32 = arith.constant 0 : i32
    %c0_i32_0 = arith.constant 0 : i32
    %c0_i32_1 = arith.constant 0 : i32
    return %c0_i32, %c0_i32_0 : i32, i32
  }
  func.func @transform_5(%arg0: i32) -> (i32, i32) {
    %c0_i32 = arith.constant 0 : i32
    %c0_i32_0 = arith.constant 0 : i32
    %c0_i32_1 = arith.constant 0 : i32
    return %c0_i32, %c0_i32_0 : i32, i32
  }
  func.func @transform_6(%arg0: i32) -> (i32, i32) {
    %c0_i32 = arith.constant 0 : i32
    %c0_i32_0 = arith.constant 0 : i32
    %c0_i32_1 = arith.constant 0 : i32
    return %c0_i32, %c0_i32_0 : i32, i32
  }
  func.func @transform_7(%arg0: i32) -> (i32, i32, i32) {
    %c0_i32 = arith.constant 0 : i32
    %c0_i32_0 = arith.constant 0 : i32
    %c0_i32_1 = arith.constant 0 : i32
    %c0_i32_2 = arith.constant 0 : i32
    return %c0_i32, %c0_i32_0, %c0_i32_1 : i32, i32, i32
  }
  func.func @transform_8(%arg0: i32) -> (i32, i32, i32) {
    %c0_i32 = arith.constant 0 : i32
    %c0_i32_0 = arith.constant 0 : i32
    %c0_i32_1 = arith.constant 0 : i32
    %c0_i32_2 = arith.constant 0 : i32
    return %c0_i32, %c0_i32_0, %c0_i32_1 : i32, i32, i32
  }
  func.func @transform_9(%arg0: i32) -> (i32, i32, i32) {
    %c0_i32 = arith.constant 0 : i32
    %c0_i32_0 = arith.constant 0 : i32
    %c0_i32_1 = arith.constant 0 : i32
    %c0_i32_2 = arith.constant 0 : i32
    return %c0_i32, %c0_i32_0, %c0_i32_1 : i32, i32, i32
  }
  func.func @transform_10(%arg0: i32) -> (i32, i32, i32) {
    %c0_i32 = arith.constant 0 : i32
    %c0_i32_0 = arith.constant 0 : i32
    %c0_i32_1 = arith.constant 0 : i32
    %c0_i32_2 = arith.constant 0 : i32
    return %c0_i32, %c0_i32_0, %c0_i32_1 : i32, i32, i32
  }
  func.func @transform_11(%arg0: i32) -> (i32, i32, i32) {
    %c0_i32 = arith.constant 0 : i32
    %c0_i32_0 = arith.constant 0 : i32
    %c0_i32_1 = arith.constant 0 : i32
    %c0_i32_2 = arith.constant 0 : i32
    return %c0_i32, %c0_i32_0, %c0_i32_1 : i32, i32, i32
  }
  func.func @transform_12(%arg0: i32) -> (i32, i32, i32) {
    %c0_i32 = arith.constant 0 : i32
    %c0_i32_0 = arith.constant 0 : i32
    %c0_i32_1 = arith.constant 0 : i32
    %c0_i32_2 = arith.constant 0 : i32
    return %c0_i32, %c0_i32_0, %c0_i32_1 : i32, i32, i32
  }
  func.func @transform_13(%arg0: i32) -> (i32, i32, i32) {
    %c0_i32 = arith.constant 0 : i32
    %c0_i32_0 = arith.constant 0 : i32
    %c0_i32_1 = arith.constant 0 : i32
    %c0_i32_2 = arith.constant 0 : i32
    return %c0_i32, %c0_i32_0, %c0_i32_1 : i32, i32, i32
  }
  func.func @transform_14(%arg0: i32) -> (i32, i32, i32) {
    %c0_i32 = arith.constant 0 : i32
    %c0_i32_0 = arith.constant 0 : i32
    %c0_i32_1 = arith.constant 0 : i32
    %c0_i32_2 = arith.constant 0 : i32
    return %c0_i32, %c0_i32_0, %c0_i32_1 : i32, i32, i32
  }
  func.func @transform_15(%arg0: i32) -> (i32, i32) {
    %c0_i32 = arith.constant 0 : i32
    %c0_i32_0 = arith.constant 0 : i32
    %c0_i32_1 = arith.constant 0 : i32
    return %c0_i32, %c0_i32_0 : i32, i32
  }
  func.func @transform_16(%arg0: i32) -> (i32, i32) {
    %c0_i32 = arith.constant 0 : i32
    %c0_i32_0 = arith.constant 0 : i32
    %c0_i32_1 = arith.constant 0 : i32
    return %c0_i32, %c0_i32_0 : i32, i32
  }
  func.func @transform_17(%arg0: i32) -> (i32, i32, i32) {
    %c0_i32 = arith.constant 0 : i32
    %c0_i32_0 = arith.constant 0 : i32
    %c0_i32_1 = arith.constant 0 : i32
    return %arg0, %c0_i32, %c0_i32_0 : i32, i32, i32
  }
}

</mosaic_0001>

<bundles_post_ra>
// kernel: tpu_custom_call.1
= control target key start
LH: loop header
LB: loop body
LE: loop exit
PB: predicated region body
PF: predicated region fallthrough
CT: control target
= control target key end

     0   :  { %s6077_s0 = inlined_call_operand.vmem [shape: f32[4,16,8], index: 0, kind: input, shape index: {}]   ;;  %s6078_s1 = inlined_call_operand.hbm [shape: f32[4,16,16], index: 1, kind: input, shape index: {}]   ;;  %s6079_s2 = inlined_call_operand.vmem [shape: f32[8,128], index: 2, kind: input, shape index: {}]   ;;  %s6080_s3 = inlined_call_operand.vmem [shape: bf16[8,128], index: 3, kind: input, shape index: {}]   ;;  %s6081_s4 = inlined_call_operand.vmem [shape: f32[1,128], index: 4, kind: input, shape index: {}]   ;;  %s6082_s5 = inlined_call_operand.hbm [shape: bf16[128,128], index: 5, kind: input, shape index: {}]   ;;  %s6083_s6 = inlined_call_operand.vmem [shape: f32[1,128], index: 6, kind: input, shape index: {}]   ;;  %s6084_s7 = inlined_call_operand.vmem [shape: bf16[2,128,128], index: 7, kind: input, shape index: {}]   ;;  %s6085_s8 = inlined_call_operand.vmem [shape: f32[2,1,128], index: 8, kind: input, shape index: {}]   ;;  %s6086_s9 = inlined_call_operand.hbm [shape: bf16[2,128,128], index: 9, kind: input, shape index: {}]   ;;  %s6087_s10 = inlined_call_operand.hbm [shape: bf16[2,128,128], index: 10, kind: input, shape index: {}]   ;;  %s6088_s11 = inlined_call_operand.hbm [shape: bf16[2,128,128], index: 11, kind: input, shape index: {}]   ;;  %s6089_s12 = inlined_call_operand.hbm [shape: bf16[2,128,128], index: 12, kind: input, shape index: {}]   ;;  %s6090_s13 = inlined_call_operand.hbm [shape: bf16[2,128,128], index: 13, kind: input, shape index: {}]   ;;  %s6091_s14 = inlined_call_operand.hbm [shape: bf16[2,128,128], index: 14, kind: input, shape index: {}]   ;;  %s6092_s15 = inlined_call_operand.vmem [shape: bf16[128,4], index: 15, kind: input, shape index: {}]   ;;  %s6093_s16 = inlined_call_operand.vmem [shape: f32[1,4], index: 16, kind: input, shape index: {}]   ;;  %s6094_s17 = inlined_call_operand.hbm [shape: f32[4,1,4], index: 17, kind: output, shape index: {}]  }
   0x1   :  { %6102 = sst [smem:[#allocation23_spill]] %s6077_s0 }
   0x2   :  { %6103 = sst [smem:[#allocation24_spill]] %s6078_s1 }
   0x3   :  { %6104 = sst [smem:[#allocation25_spill]] %s6079_s2 }
   0x4   :  { %6105 = sst [smem:[#allocation26_spill]] %s6081_s4 }
   0x5   :  { %6106 = sst [smem:[#allocation27_spill]] %s6082_s5 }
   0x6   :  { %6107 = sst [smem:[#allocation28_spill]] %s6083_s6 }
   0x7   :  { %6108 = sst [smem:[#allocation29_spill]] %s6085_s8 }
   0x8   :  { %6109 = sst [smem:[#allocation30_spill]] %s6092_s15 }
   0x9   :  { %6110 = sst [smem:[#allocation31_spill]] %s6093_s16 }
   0xa   :  { %6111 = sst [smem:[#allocation32_spill]] %s6094_s17 }
   0xb   :  { %22 = vsyncpa [#allocation3], 0 }
   0xc   :  { %24 = vsyncpa [#allocation3 + $0x1], 0 }
   0xd   :  { %25 = vsyncpa [#allocation6], 0 }
   0xe   :  { %26 = vsyncpa [#allocation9], 0 }
   0xf   :  { %27 = vsyncpa [#allocation12], 0 }
  0x10   :  { %28 = vsyncpa [#allocation15], 0 }
  0x11   :  { %29 = vsyncpa [#allocation4], 0 }
  0x12   :  { %31 = vsyncpa [#allocation4 + $0x1], 0  ;;  %s5254_s24 = smov 0   ;;  %s5256_s25 = smov 0  }
  0x13   :  { %s5258_s26 = smov 0   ;;  %s5260_s27 = smov 0  }
  0x14 LB: > { %s5146_s28 = smov [#allocation5]   ;;  %s5275_s0 = sadd.s32 4294967295, %s5144_s27   ;;  %s5144_s27 = sphi %s5260_s27, %s6144_s27   ;;  %s5140_s26 = sphi %s5258_s26, %s6143_s26   ;;  %s5136_s25 = sphi %s5256_s25, %s6142_s25   ;;  %s5132_s24 = sphi %s5254_s24, %s6141_s24  }
  0x15   : > { %s456_s29 = sshll.u32 %s5146_s28, 4  ;;  %p3709_p0 = scmp.ge.s32.totalorder %s5144_s27, 1  ;;  %s5280_s29 = int_to_ptr.vmem [resolvable:$true] %s456_s29 }
  0x16   : > { %p6099_p1 = scmp.eq.s32.totalorder %s5275_s0, 0  ;;  %p435_p2 = scmp.lt.s32.totalorder %s5144_s27, 5 }
  0x17   : > { %s5147_s18 = smov [#allocation8]   ;;  %s5148_s20 = smov [#allocation11]  }
  0x18   : > { %p5282_p3 = pnand %p3709_p0, %p435_p2  ;;  %s491_s19 = sshll.u32 %s5147_s18, 4  ;;  %s5294_s19 = int_to_ptr.vmem [resolvable:$true] %s491_s19 }
  0x19   : > { %s517_s21 = sshll.u32 %s5148_s20, 4  ;;  %s6114_s5 = sld [smem:[#allocation27_spill]]  ;;  %s5296_s21 = int_to_ptr.vmem [resolvable:$true] %s517_s21 }
  0x1a   : > { %s6112_s30 = scalar_select %p5282_p3, 1, 0 }
  0x1b   : > { %p4526_p4 = pneg %p5282_p3 }
  0x1d   : > { %p5290_p5 = pnand %p4526_p4, %p6099_p1 }
  0x1f   : > { %s4836_s28 = scalar_lea.hbm %s6114_s5, 1024  ;;  %p5306_p7 = pneg %p5290_p5 }
  0x20   : > { %p4837_p6 = scmp.ne.s32.totalorder %s6114_s5, %s4836_s28  ;;  %p4843_p10 = scmp.lt.u32.totalorder %s4836_s28, %s6114_s5 }
  0x22   : > { %p4839_p8 = pnand %p5306_p7, %p4837_p6 }
  0x24   : > { %p4840_p9 = pneg %p4839_p8 }
  0x26   : > { %p4845_p11 = pnand %p4843_p10, %p4840_p9 }
  0x28   : > { %4848 = shalt.err (!%p4845_p11)
}
  0x29   : > { %s4849_s16 = scalar_lea.vmem %s5280_s29, 1024  ;;  %p4857_p2 = scmp.lt.s32.totalorder %s5280_s29, %s5280_s29 }
  0x2a   : > { %p4850_p12 = scmp.ne.s32.totalorder %s5280_s29, %s4849_s16  ;;  %p4858_p4 = scmp.lt.s32.totalorder %s4849_s16, %s4849_s16 }
  0x2c   : > { %p4852_p13 = pnand %p4850_p12, %p5306_p7  ;;  %p4859_p6 = por %p4858_p4, %p4857_p2 }
  0x2e   : > { %p4853_p0 = pneg %p4852_p13 }
  0x30   : > { %p4860_p8 = pnand %p4859_p6, %p4853_p0 }
  0x32   : > { %4863 = shalt.err (!%p4860_p8)
}
  0x33   : > { %s5149_s17 = smov 64   ;;  %s5150_s15 = smov 4  }
  0x34   : > { %4529 = dma.hbm_to_vmem [thread:$0]  (!%p5290_p5), %s6114_s5, 1024, %s5280_s29, [#allocation6], %s5149_s17, %s5149_s17, %s5150_s15  }
  0x35   : > { %s4864_s16 = scalar_lea.hbm %s6087_s10, 2048 }
  0x36   : > { %p4865_p9 = scmp.ne.s32.totalorder %s6087_s10, %s4864_s16  ;;  %p4871_p12 = scmp.lt.u32.totalorder %s4864_s16, %s6087_s10 }
  0x38   : > { %p4867_p10 = pnand %p4865_p9, %p5306_p7 }
  0x3a   : > { %p4868_p11 = pneg %p4867_p10 }
  0x3c   : > { %p4873_p13 = pnand %p4871_p12, %p4868_p11 }
  0x3e   : > { %4876 = shalt.err (!%p4873_p13)
}
  0x3f   : > { %s4877_s29 = scalar_lea.vmem %s5294_s19, 2048  ;;  %p4885_p6 = scmp.lt.s32.totalorder %s5294_s19, %s5294_s19 }
  0x40   : > { %p4878_p0 = scmp.ne.s32.totalorder %s5294_s19, %s4877_s29  ;;  %p4886_p8 = scmp.lt.s32.totalorder %s4877_s29, %s4877_s29 }
  0x42   : > { %p4880_p2 = pnand %p4878_p0, %p5306_p7  ;;  %p4887_p9 = por %p4886_p8, %p4885_p6 }
  0x44   : > { %p4881_p4 = pneg %p4880_p2 }
  0x46   : > { %p4888_p10 = pnand %p4887_p9, %p4881_p4 }
  0x48   : > { %4891 = shalt.err (!%p4888_p10)
}
  0x49   : > { %4535 = dma.hbm_to_vmem [thread:$0]  (!%p5290_p5), %s6087_s10, 2048, %s5294_s19, [#allocation9], %s5149_s17, %s5149_s17, %s5150_s15  }
  0x4a   : > { %s4892_s22 = scalar_lea.hbm %s6089_s12, 2048 }
  0x4b   : > { %p4893_p11 = scmp.ne.s32.totalorder %s6089_s12, %s4892_s22  ;;  %p4899_p0 = scmp.lt.u32.totalorder %s4892_s22, %s6089_s12 }
  0x4d   : > { %p4895_p12 = pnand %p4893_p11, %p5306_p7 }
  0x4f   : > { %p4896_p13 = pneg %p4895_p12 }
  0x51   : > { %p4901_p2 = pnand %p4899_p0, %p4896_p13 }
  0x53   : > { %4904 = shalt.err (!%p4901_p2)
}
  0x54   : > { %s4905_s19 = scalar_lea.vmem %s5296_s21, 2048  ;;  %p4913_p9 = scmp.lt.s32.totalorder %s5296_s21, %s5296_s21 }
  0x55   : > { %p4906_p4 = scmp.ne.s32.totalorder %s5296_s21, %s4905_s19  ;;  %p4914_p10 = scmp.lt.s32.totalorder %s4905_s19, %s4905_s19 }
  0x57   : > { %p4908_p6 = pnand %p4906_p4, %p5306_p7  ;;  %p4915_p11 = por %p4914_p10, %p4913_p9 }
  0x59   : > { %p4909_p8 = pneg %p4908_p6 }
  0x5b   : > { %p4916_p12 = pnand %p4915_p11, %p4909_p8 }
  0x5d   : > { %4919 = shalt.err (!%p4916_p12)
}
  0x5e   : > { %4541 = dma.hbm_to_vmem [thread:$0]  (!%p5290_p5), %s6089_s12, 2048, %s5296_s21, [#allocation12], %s5149_s17, %s5149_s17, %s5150_s15  }
  0x5f   : > { %s5151_s4 = smov [#allocation7]   ;;  %s5152_s8 = smov [#allocation10]  }
  0x60   : > { %s478_s6 = sshll.u32 %s5151_s4, 4  ;;  %s504_s22 = sshll.u32 %s5152_s8, 4  ;;  %s479_s6 = int_to_ptr.vmem [resolvable:$true] %s478_s6  ;;  %s505_s22 = int_to_ptr.vmem [resolvable:$true] %s504_s22 }
  0x61   : > { %s4920_s20 = scalar_lea.hbm %s6086_s9, 2048 }
  0x62   : > { %p4921_p13 = scmp.ne.s32.totalorder %s6086_s9, %s4920_s20  ;;  %p4927_p4 = scmp.lt.u32.totalorder %s4920_s20, %s6086_s9 }
  0x64   : > { %p4923_p0 = pnand %p4921_p13, %p5306_p7 }
  0x66   : > { %p4924_p2 = pneg %p4923_p0 }
  0x68   : > { %p4929_p6 = pnand %p4927_p4, %p4924_p2 }
  0x6a   : > { %4932 = shalt.err (!%p4929_p6)
}
  0x6b   : > { %s4933_s21 = scalar_lea.vmem %s479_s6, 2048  ;;  %p4941_p11 = scmp.lt.s32.totalorder %s479_s6, %s479_s6 }
  0x6c   : > { %p4934_p8 = scmp.ne.s32.totalorder %s479_s6, %s4933_s21  ;;  %p4942_p12 = scmp.lt.s32.totalorder %s4933_s21, %s4933_s21 }
  0x6e   : > { %p4936_p9 = pnand %p4934_p8, %p5306_p7  ;;  %p4943_p1 = por %p4942_p12, %p4941_p11 }
  0x70   : > { %p4937_p10 = pneg %p4936_p9 }
  0x72   : > { %p4944_p3 = pnand %p4943_p1, %p4937_p10 }
  0x74   : > { %4947 = shalt.err (!%p4944_p3)
}
  0x75   : > { %4532 = dma.hbm_to_vmem [thread:$0]  (!%p5290_p5), %s6086_s9, 2048, %s479_s6, [#allocation6], %s5149_s17, %s5149_s17, %s5150_s15  }
  0x76   : > { %s4948_s23 = scalar_lea.hbm %s6088_s11, 2048 }
  0x77   : > { %p4949_p1 = scmp.ne.s32.totalorder %s6088_s11, %s4948_s23  ;;  %p4955_p0 = scmp.lt.u32.totalorder %s4948_s23, %s6088_s11 }
  0x79   : > { %p4951_p3 = pnand %p4949_p1, %p5306_p7 }
  0x7b   : > { %p4952_p13 = pneg %p4951_p3 }
  0x7d   : > { %p4957_p2 = pnand %p4955_p0, %p4952_p13 }
  0x7f   : > { %4960 = shalt.err (!%p4957_p2)
}
  0x80   : > { %s4961_s29 = scalar_lea.vmem %s505_s22, 2048  ;;  %p4969_p9 = scmp.lt.s32.totalorder %s505_s22, %s505_s22 }
  0x81   : > { %p4962_p4 = scmp.ne.s32.totalorder %s505_s22, %s4961_s29  ;;  %p4970_p10 = scmp.lt.s32.totalorder %s4961_s29, %s4961_s29 }
  0x83   : > { %p4964_p6 = pnand %p4962_p4, %p5306_p7  ;;  %p4971_p11 = por %p4970_p10, %p4969_p9 }
  0x85   : > { %p4965_p8 = pneg %p4964_p6 }
  0x87   : > { %p4972_p12 = pnand %p4971_p11, %p4965_p8 }
  0x89   : > { %4975 = shalt.err (!%p4972_p12)
}
  0x8a   : > { %4538 = dma.hbm_to_vmem [thread:$0]  (!%p5290_p5), %s6088_s11, 2048, %s505_s22, [#allocation9], %s5149_s17, %s5149_s17, %s5150_s15  }
  0x8b   : > { %s5153_s5 = smov [#allocation13]   ;;  %s5154_s4 = smov [#allocation14]  }
  0x8c   : > { %s530_s2 = sshll.u32 %s5153_s5, 4  ;;  %s543_s8 = sshll.u32 %s5154_s4, 4  ;;  %s531_s2 = int_to_ptr.vmem [resolvable:$true] %s530_s2  ;;  %s544_s8 = int_to_ptr.vmem [resolvable:$true] %s543_s8 }
  0x8d   : > { %s4976_s20 = scalar_lea.hbm %s6090_s13, 2048 }
  0x8e   : > { %p4977_p1 = scmp.ne.s32.totalorder %s6090_s13, %s4976_s20  ;;  %p4983_p0 = scmp.lt.u32.totalorder %s4976_s20, %s6090_s13 }
  0x90   : > { %p4979_p3 = pnand %p4977_p1, %p5306_p7 }
  0x92   : > { %p4980_p13 = pneg %p4979_p3 }
  0x94   : > { %p4985_p2 = pnand %p4983_p0, %p4980_p13 }
  0x96   : > { %4988 = shalt.err (!%p4985_p2)
}
  0x97   : > { %s4989_s22 = scalar_lea.vmem %s531_s2, 2048  ;;  %p4997_p9 = scmp.lt.s32.totalorder %s531_s2, %s531_s2 }
  0x98   : > { %p4990_p4 = scmp.ne.s32.totalorder %s531_s2, %s4989_s22  ;;  %p4998_p10 = scmp.lt.s32.totalorder %s4989_s22, %s4989_s22 }
  0x9a   : > { %p4992_p6 = pnand %p4990_p4, %p5306_p7  ;;  %p4999_p11 = por %p4998_p10, %p4997_p9 }
  0x9c   : > { %p4993_p8 = pneg %p4992_p6 }
  0x9e   : > { %p5000_p12 = pnand %p4999_p11, %p4993_p8 }
  0xa0   : > { %5003 = shalt.err (!%p5000_p12)
}
  0xa1   : > { %4544 = dma.hbm_to_vmem [thread:$0]  (!%p5290_p5), %s6090_s13, 2048, %s531_s2, [#allocation12], %s5149_s17, %s5149_s17, %s5150_s15  }
  0xa2   : > { %s5004_s28 = scalar_lea.hbm %s6091_s14, 2048 }
  0xa3   : > { %p5005_p1 = scmp.ne.s32.totalorder %s6091_s14, %s5004_s28  ;;  %p5011_p0 = scmp.lt.u32.totalorder %s5004_s28, %s6091_s14 }
  0xa5   : > { %p5007_p3 = pnand %p5005_p1, %p5306_p7 }
  0xa7   : > { %p5008_p13 = pneg %p5007_p3 }
  0xa9   : > { %p5013_p2 = pnand %p5011_p0, %p5008_p13 }
  0xab   : > { %5016 = shalt.err (!%p5013_p2)
}
  0xac   : > { %s5017_s6 = scalar_lea.vmem %s544_s8, 2048  ;;  %p5025_p9 = scmp.lt.s32.totalorder %s544_s8, %s544_s8 }
  0xad   : > { %p5018_p4 = scmp.ne.s32.totalorder %s544_s8, %s5017_s6  ;;  %p5026_p10 = scmp.lt.s32.totalorder %s5017_s6, %s5017_s6 }
  0xaf   : > { %p5020_p6 = pnand %p5018_p4, %p5306_p7  ;;  %p5027_p11 = por %p5026_p10, %p5025_p9 }
  0xb1   : > { %p5021_p8 = pneg %p5020_p6 }
  0xb3   : > { %p5028_p12 = pnand %p5027_p11, %p5021_p8 }
  0xb5   : > { %5031 = shalt.err (!%p5028_p12)
}
  0xb6   : > { %4547 = dma.hbm_to_vmem [thread:$0]  (!%p5290_p5), %s6091_s14, 2048, %s544_s8, [#allocation15], %s5149_s17, %s5149_s17, %s5150_s15  }
  0xb7   : > { %s3708_s1 = sadd.s32 4294967294, %s5144_s27   ;;  %s5468_s18 = sadd.s32 1, %s5144_s27  }
  0xb8   : > { %s70_s21 = sadd.s32 1, %s5140_s26  ;;  %s67_s5 = ssub.s32 %s5144_s27, %s5468_s18 }
  0xb9   : > { %p77_p7 = scmp.ne.s32.totalorder %s5140_s26, %s5136_s25  ;;  %p68_p1 = scmp.eq.s32.totalorder %s67_s5, 0 }
  0xba   : > { %p78_p3 = scmp.eq.s32.totalorder %s5144_s27, 0  ;;  %p83_p13 = scmp.ne.s32.totalorder %s5136_s25, %s5132_s24 }
  0xbb   : > { %p422_p0 = scmp.eq.s32.totalorder %s5275_s0, 3  ;;  %p6116_p4 = scmp.eq.s32.totalorder %s5275_s0, 0 }
  0xbc   : > { %s5480_s4 = scalar_select %p68_p1, %s5140_s26, %s70_s21  }
  0xbd   : > { %p79_p2 = por %p78_p3, %p77_p7  ;;  %p5484_p6 = por %p6116_p4, %p83_p13 }
  0xbe   : > { %p5488_p5 = por %p422_p0, %p77_p7  ;;  %p428_p8 = scmp.eq.s32.totalorder %s3708_s1, 3 }
  0xbf   : > { %p4563_p9 = scmp.lt.s32.totalorder %s5144_s27, 4  ;;  %s571_s15 = sand.u32 1, %s5140_s26  }
  0xc0   : > { %s6118_s17 = scalar_select %p5488_p5, 1, 0 }
  0xc1   : > { %p5494_p10 = por %p428_p8, %p83_p13  ;;  %s3718_s28 = sshll.u32 %s571_s15, 4 }
  0xc2   : > { %s3895_s20 = sshll.u32 %s5144_s27, 8  ;;  %s6120_s29 = sld [smem:[#allocation24_spill]] }
  0xc3   : > { %s6119_s8 = scalar_select %p5494_p10, 1, 0 }
  0xc4   : > { %s575_s2 = scalar_lea.vmem [#allocation2], %s3718_s28  ;;  %p5504_p11 = pnand %p4563_p9, %p79_p2 }
  0xc5   : > { %s582_s22 = sshll.u32 %s575_s2, 4  ;;  %s5510_s21 = scalar_lea.sflag [#allocation3], %s571_s15  ;;  %s5508_s22 = int_to_ptr.vmem [resolvable:$true] %s582_s22 }
  0xc6   : > { %p5034_p7 = pneg %p5504_p11 }
  0xc8   : > { %s5502_s6 = scalar_lea.hbm %s6120_s29, %s3895_s20  ;;  %s5037_s16 = scalar_lea.hbm %s6120_s29, 1024 }
  0xc9   : > { %s5032_s5 = scalar_lea.hbm %s5502_s6, 256  ;;  %p5038_p13 = scmp.lt.u32.totalorder %s5502_s6, %s6120_s29 }
  0xca   : > { %p5033_p12 = scmp.ne.s32.totalorder %s5502_s6, %s5032_s5  ;;  %p5039_p0 = scmp.lt.u32.totalorder %s5037_s16, %s5032_s5 }
  0xcb   : > { %p5041_p4 = scmp.lt.u32.totalorder %s5032_s5, %s5502_s6 }
  0xcc   : > { %p5035_p1 = pnand %p5034_p7, %p5033_p12  ;;  %p5040_p2 = por %p5039_p0, %p5038_p13 }
  0xce   : > { %p5036_p3 = pneg %p5035_p1  ;;  %p5042_p8 = por %p5041_p4, %p5040_p2 }
  0xd0   : > { %p5043_p9 = pnand %p5042_p8, %p5036_p3 }
  0xd2   : > { %5046 = shalt.err (!%p5043_p9)
}
  0xd3   : > { %s5047_s15 = scalar_lea.vmem %s5508_s22, 256  ;;  %s5155_s28 = smov [#allocation2]  }
  0xd4   : > { %p5048_p12 = scmp.ne.s32.totalorder %s5508_s22, %s5047_s15  ;;  %s5052_s20 = sshll.u32 %s5155_s28, 4  ;;  %s5053_s20 = int_to_ptr.vmem [resolvable:$false] %s5052_s20 }
  0xd5   : > { %s5054_s19 = scalar_lea.vmem %s5053_s20, 512  ;;  %p5055_p5 = scmp.lt.s32.totalorder %s5508_s22, %s5053_s20 }
  0xd6   : > { %p5050_p1 = pnand %p5048_p12, %p5034_p7  ;;  %p5056_p13 = scmp.lt.s32.totalorder %s5054_s19, %s5047_s15 }
  0xd8   : > { %p5051_p10 = pneg %p5050_p1  ;;  %p5057_p0 = por %p5056_p13, %p5055_p5 }
  0xda   : > { %p5058_p2 = pnand %p5057_p0, %p5051_p10 }
  0xdc   : > { %5061 = shalt.err (!%p5058_p2)
}
  0xdd   : > { %s5156_s5 = smov 128   ;;  %s5157_s16 = smov 8  }
  0xde   : > { %4551 = dma.hbm_to_vmem [thread:$0]  (!%p5504_p11), %s5502_s6, 256, %s5508_s22, %s5510_s21, %s5156_s5, %s5156_s5, %s5157_s16  }
  0xdf   : > { %p6122_p7 = scmp.ne.s32.totalorder %s6112_s30, 0 }
  0xe0   : > { %s5541_s2 = sand.u32 (!%p6122_p7), 1, %s5136_s25  }
  0xe1   : > { %594 = sbr.rel (%p6122_p7) target bundleno = 5635 (0x1603), region = 88  ;;  %s3722_s15 = sshll.u32 (!%p6122_p7), %s5541_s2, 4 }
  0xe2   : > { %s597_s28 = scalar_lea.sflag (!%p6122_p7), [#allocation3], %s5541_s2  ;;  %s5545_s20 = scalar_lea.vmem (!%p6122_p7), [#allocation2], %s3722_s15 }
  0xe8   : > { %5107 = dma.done.wait (%p5484_p6), %s597_s28, 256  }
  0xe9   : > { %5109 = vsyncadd (%p5484_p6), %s597_s28, 4294967040  ;;  %p6123_p5 = scmp.eq.s32.totalorder %s5275_s0, 0 }
  0xeb   : > { %5111 = dma.done.wait (%p6123_p5), [#allocation6], 3072   ;;  %p6124_p10 = pmov %p6123_p5 }
  0xec   : > { %p6125_p11 = pmov %p6123_p5 }
  0xed   : > { %5113 = vsyncadd (%p6124_p10), [#allocation6], 4294964224 }
  0xee   : > { %5115 = dma.done.wait (%p6125_p11), [#allocation9], 4096   ;;  %p6126_p3 = pmov %p6123_p5 }
  0xf0   : > { %5117 = vsyncadd (%p6126_p3), [#allocation9], 4294963200  ;;  %p6127_p4 = pmov %p6126_p3 }
  0xf1   : > { %p6128_p8 = pmov %p6126_p3 }
  0xf2   : > { %5119 = dma.done.wait (%p6127_p4), [#allocation12], 4096  }
  0xf3   : > { %5121 = vsyncadd (%p6128_p8), [#allocation12], 4294963200  ;;  %p6129_p6 = pmov %p6126_p3 }
  0xf4   : > { %p6130_p9 = pmov %p6126_p3 }
  0xf5   : > { %5123 = dma.done.wait (%p6129_p6), [#allocation15], 2048  }
  0xf6   : > { %5125 = vsyncadd (%p6130_p9), [#allocation15], 4294965248  ;;  %p683_p12 = scmp.lt.s32.totalorder %s5275_s0, 3  ;;  %v5158_v0 = vmov 0.0   ;;  %vm5159_vm0 = vmmov 0   ;;  %vm707_vm1 = vcmask 1043456  }
  0xf7   : > { %4070 = vmatprep.subr.bf16.mxu0 %v5158_v0  ;;  %4072 = vmatprep.mubr.msk.bf16.mxu0 %vm5159_vm0, %v5158_v0  ;;  %s6131_s1 = sld [smem:[#allocation23_spill]]  ;;  %v694_v1 = vld [vmem:[%s6080_s3] sm:$0xf]  ;;  %vm703_vm2 = vcmask 64512   ;;  %v4651_v7 = vld [vmem:[#allocation5 + $0x8] sm:$0xff]   ;;  %v4652_v8 = vld [vmem:[#allocation5 + $0x10] sm:$0xff]  }
  0xf8   : > { %s684_s30 = scalar_select %p683_p12, %s5275_s0, 3  ;;  %4076 = vmatprep.subr.bf16.mxu1 %v5158_v0  ;;  %4092 = vmatprep.mubr.msk.bf16.mxu1 %vm5159_vm0, %v5158_v0  ;;  %v709_v4 = vsel %vm707_vm1, %v694_v1, 0  ;;  %v4650_v6 = vld [vmem:[#allocation5] sm:$0xff]   ;;  %v4653_v9 = vld [vmem:[#allocation5 + $0x18] sm:$0xff]   ;;  %v4655_v11 = vld [vmem:[#allocation5 + $0x28] sm:$0xff]   ;;  %vm985_vm3 = vcmask 130048  }
  0xf9   : > { %4071 = vmatpush3.bf16.msra.mxu0 %v709_v4  ;;  %4077 = vmatpush3.bf16.msra.mxu1 %v4650_v6  ;;  %v4654_v10 = vld [vmem:[#allocation5 + $0x20] sm:$0xff]   ;;  %v4656_v12 = vld [vmem:[#allocation5 + $0x30] sm:$0xff]   ;;  %v4657_v13 = vld [vmem:[#allocation5 + $0x38] sm:$0xff]   ;;  %s6133_s5 = sld [smem:[#allocation28_spill]]  ;;  %s6134_s28 = sld [smem:[#allocation25_spill]]  ;;  %vm1346_vm4 = vcmask 261120  }
  0xfa   : > { %s3896_s23 = sshll.u32 %s684_s30, 4  ;;  %4096 = vmatprep.subr.bf16.mxu0 %v5158_v0  ;;  %4078 = vmatprep.subr.bf16.mxu1 %v5158_v0  ;;  %v4658_v14 = vld [vmem:[%s6084_s7] sm:$0xff]   ;;  %v4659_v15 = vld [vmem:[%s6084_s7 + $0x8] sm:$0xff]   ;;  %v4660_v16 = vld [vmem:[%s6084_s7 + $0x10] sm:$0xff]   ;;  %s6132_s30 = sld [smem:[#allocation26_spill]]  ;;  %vm1870_vm5 = vcmask 523264  }
  0xfb   : > { %v4661_v17 = vld [vmem:[%s6084_s7 + $0x18] sm:$0xff]   ;;  %v4662_v18 = vld [vmem:[%s6084_s7 + $0x20] sm:$0xff]   ;;  %v4663_v19 = vld [vmem:[%s6084_s7 + $0x28] sm:$0xff]   ;;  %vm1873_vm6 = vcmask 785408   ;;  %s6135_s6 = sld [smem:[#allocation29_spill]]  ;;  %s682_s22 = scalar_lea.vmem [#allocation16], %s5541_s2 }
  0xfc   : > { %v4664_v30 = vld [vmem:[%s6084_s7 + $0x30] sm:$0xff]   ;;  %v4665_v31 = vld [vmem:[%s6084_s7 + $0x38] sm:$0xff]   ;;  %v4666_v43 = vld [vmem:[#allocation8] sm:$0xff]   ;;  %vm3548_vm7 = vcmask 24576   ;;  %p6139_p13 = scmp.ne.s32.totalorder %s6118_s17, 0 }
  0xfd   : > { %s687_s21 = scalar_lea.vmem %s6131_s1, %s3896_s23  ;;  %4079 = vmatpush3.bf16.msra.mxu1 %v4651_v7  ;;  %v4667_v44 = vld [vmem:[#allocation8 + $0x8] sm:$0xff]   ;;  %v4668_v45 = vld [vmem:[#allocation8 + $0x10] sm:$0xff]   ;;  %v4670_v46 = vld [vmem:[#allocation8 + $0x18] sm:$0xff]   ;;  %s5162_s23 = smov 64  }
  0xfe   : > { %v692_v2 = vld [vmem:[%s687_s21] sm:$0xff]  ;;  %v693_v3 = vld [vmem:[%s687_s21 + $0x8] sm:$0xff]  ;;  %4080 = vmatprep.subr.bf16.mxu1 %v5158_v0  ;;  %v4676_v49 = vld [vmem:[#allocation8 + $0x30] sm:$0xff]   ;;  %s3563_s1 = sshll.u32 %s682_s22, 4  ;;  %s6036_s1 = int_to_ptr.vmem [resolvable:$true] %s3563_s1 }
  0xff   : > { %v695_v5 = vpack.c.bf16 %v693_v3, %v692_v2  ;;  %v3734_v32 = vld [vmem:[%s6133_s5] ss:$0 sm:$0xff]  ;;  %v4674_v48 = vld [vmem:[#allocation8 + $0x28] sm:$0xff]   ;;  %v4678_v50 = vld [vmem:[#allocation8 + $0x38] sm:$0xff]   ;;  %s6138_s5 = sld [smem:[#allocation32_spill]]  ;;  %s5062_s15 = scalar_lea.vmem %s6036_s1, 16 }
 0x100   : > { %v3732_v20 = vld [vmem:[%s6132_s30] ss:$0 sm:$0xff]  ;;  %v690_v56 = vld [vmem:[%s5545_s20 + $0x8] sm:$0xff]  ;;  %v4673_v63 = vld [vmem:[#allocation7 + $0x10] sm:$0xff]   ;;  %s5161_s30 = smov 32   ;;  %p5063_p1 = scmp.ne.s32.totalorder %s6036_s1, %s5062_s15 }
 0x101   : > { %4073 = vmatmul.mubr.msk.bf16.vlgmr.msra.gmra.mrb[0].mxu0 %vm703_vm2, %v695_v5  ;;  %4081 = vmatpush3.bf16.msra.mxu1 %v4652_v8  ;;  %v4672_v47 = vld [vmem:[#allocation8 + $0x20] sm:$0xff]   ;;  %v4671_v62 = vld [vmem:[#allocation7 + $0x8] sm:$0xff]   ;;  %v4675_v1 = vld [vmem:[#allocation7 + $0x18] sm:$0xff]  }
 0x102   : > { %4112 = vmatprep.mubr.msk.bf16.mxu0 %vm5159_vm0, %v5158_v0  ;;  %4082 = vmatprep.subr.bf16.mxu1 %v5158_v0  ;;  %v5651_v51 = vld [vmem:[%s6134_s28] sm:$0xff]  ;;  %v4679_v3 = vld [vmem:[#allocation7 + $0x28] sm:$0xff]   ;;  %v4680_v4 = vld [vmem:[#allocation7 + $0x30] sm:$0xff]   ;;  %p5064_p0 = pnand %p5063_p1, %p6139_p13  ;;  %s5163_s28 = smov [#allocation16]  }
 0x103   : > { %4097 = vmatpush3.bf16.msra.mxu0 %v4658_v14  ;;  %v5655_v52 = vpack.c.bf16 %v5651_v51, %v5651_v51  ;;  %v689_v55 = vld [vmem:[%s5545_s20] sm:$0xff]  ;;  %v4681_v5 = vld [vmem:[#allocation7 + $0x38] sm:$0xff]   ;;  %v4683_v7 = vld [vmem:[#allocation10 + $0x8] sm:$0xff]   ;;  %s5160_s20 = smov 96  }
 0x104   : > { %4098 = vmatprep.subr.bf16.mxu0 %v5158_v0  ;;  %v5663_v60 = vpack.c.bf16 %v690_v56, %v689_v55  ;;  %v4669_v61 = vld [vmem:[#allocation7] sm:$0xff]   ;;  %v4684_v8 = vld [vmem:[#allocation10 + $0x10] sm:$0xff]   ;;  %p5065_p2 = pneg %p5064_p0 }
 0x105   : > { %4083 = vmatpush3.bf16.msra.mxu1 %v4653_v9  ;;  %v4677_v2 = vld [vmem:[#allocation7 + $0x20] sm:$0xff]   ;;  %v4685_v9 = vld [vmem:[#allocation10 + $0x18] sm:$0xff]  }
 0x106   : > { %4084 = vmatprep.subr.bf16.mxu1 %v5158_v0  ;;  %v4682_v6 = vld [vmem:[#allocation10] sm:$0xff]  }
 0x107   : > { %4099 = vmatpush3.bf16.msra.mxu0 %v4659_v15 }
 0x108   : > { %4100 = vmatprep.subr.bf16.mxu0 %v5158_v0 }
 0x109   : > { %4085 = vmatpush3.bf16.msra.mxu1 %v4654_v10  ;;  %v4686_v10 = vld [vmem:[#allocation10 + $0x20] sm:$0xff]  }
 0x10a   : > { %4086 = vmatprep.subr.bf16.mxu1 %v5158_v0 }
 0x10b   : > { %4101 = vmatpush3.bf16.msra.mxu0 %v4660_v16 }
 0x10c   : > { %4102 = vmatprep.subr.bf16.mxu0 %v5158_v0 }
 0x10d   : > { %4087 = vmatpush3.bf16.msra.mxu1 %v4655_v11  ;;  %v4687_v11 = vld [vmem:[#allocation10 + $0x28] sm:$0xff]  }
 0x10e   : > { %4088 = vmatprep.subr.bf16.mxu1 %v5158_v0 }
 0x10f   : > { %4103 = vmatpush3.bf16.msra.mxu0 %v4661_v17 }
 0x110   : > { %4104 = vmatprep.subr.bf16.mxu0 %v5158_v0 }
 0x111   : > { %4089 = vmatpush3.bf16.msra.mxu1 %v4656_v12  ;;  %v4688_v12 = vld [vmem:[#allocation10 + $0x30] sm:$0xff]  }
 0x112   : > { %4090 = vmatprep.subr.bf16.mxu1 %v5158_v0 }
 0x113   : > { %4105 = vmatpush3.bf16.msra.mxu0 %v4662_v18 }
 0x114   : > { %4106 = vmatprep.subr.bf16.mxu0 %v5158_v0 }
 0x115   : > { %4091 = vmatpush3.bf16.msra.mxu1 %v4657_v13  ;;  %v4689_v13 = vld [vmem:[#allocation10 + $0x38] sm:$0xff]  }
 0x116   : > { %4142 = vmatprep.subr.bf16.mxu1 %v5158_v0 }
 0x117   : > { %4107 = vmatpush3.bf16.msra.mxu0 %v4663_v19 }
 0x118   : > { %4108 = vmatprep.subr.bf16.mxu0 %v5158_v0 }
 0x11b   : > { %4109 = vmatpush3.bf16.msra.mxu0 %v4664_v30 }
 0x11c   : > { %4110 = vmatprep.subr.bf16.mxu0 %v5158_v0 }
 0x11f   : > { %4111 = vmatpush3.bf16.msra.mxu0 %v4665_v31 }
 0x120   : > { %4116 = vmatprep.subr.bf16.mxu0 %v5158_v0 }
 0x1d4   : > { %v745_v21 = vpop.f32.mrb[0].mxu0 }
 0x1d5   : > { %v746_v22 = vadd.f32 %v3732_v20, %v745_v21  ;;  %v4074_v23 = vpop.f32.mrb[1].mxu0 }
 0x1d6   : > { %v748_v24 = vpop.f32.mrb[2].mxu0 }
 0x1d7   : > { %v749_v25 = vadd.f32 %v3732_v20, %v748_v24  ;;  %v4075_v26 = vpop.f32.mrb[3].mxu0  ;;  %v752_v27 = vmax.f32 %v746_v22, 0.0 }
 0x1d9   : > { %v753_v28 = vmax.f32 %v749_v25, 0.0 }
 0x1db   : > { %v770_v29 = vpack.c.bf16 %v753_v28, %v752_v27 }
 0x1dd   : > { %4093 = vmatmul.mubr.bf16.vlgmr.msra.gmra.mrb[0].mxu1 %v770_v29 }
 0x1de   : > { %4158 = vmatprep.mubr.msk.bf16.mxu1 %vm5159_vm0, %v5158_v0  ;;  %4143 = vmatpush3.bf16.msra.mxu1 %v4666_v43 }
 0x1df   : > { %4144 = vmatprep.subr.bf16.mxu1 %v5158_v0 }
 0x1e2   : > { %4145 = vmatpush3.bf16.msra.mxu1 %v4667_v44 }
 0x1e3   : > { %4146 = vmatprep.subr.bf16.mxu1 %v5158_v0 }
 0x1e6   : > { %4147 = vmatpush3.bf16.msra.mxu1 %v4668_v45 }
 0x1e7   : > { %4148 = vmatprep.subr.bf16.mxu1 %v5158_v0 }
 0x1ea   : > { %4149 = vmatpush3.bf16.msra.mxu1 %v4670_v46 }
 0x1eb   : > { %4150 = vmatprep.subr.bf16.mxu1 %v5158_v0 }
 0x1ee   : > { %4151 = vmatpush3.bf16.msra.mxu1 %v4672_v47 }
 0x1ef   : > { %4152 = vmatprep.subr.bf16.mxu1 %v5158_v0 }
 0x1f2   : > { %4153 = vmatpush3.bf16.msra.mxu1 %v4674_v48 }
 0x1f3   : > { %4154 = vmatprep.subr.bf16.mxu1 %v5158_v0 }
 0x1f6   : > { %4155 = vmatpush3.bf16.msra.mxu1 %v4676_v49 }
 0x1f7   : > { %4156 = vmatprep.subr.bf16.mxu1 %v5158_v0 }
 0x1fa   : > { %4157 = vmatpush3.bf16.msra.mxu1 %v4678_v50 }
 0x1fb   : > { %4188 = vmatprep.subr.bf16.mxu1 %v5158_v0 }
 0x1fd   : > { %4159 = vmatmul.mubr.bf16.vlgmr.msra.gmra.mrb[4].mxu1 %v5655_v52 }
 0x1fe   : > { %4190 = vmatprep.mubr.msk.bf16.mxu1 %vm5159_vm0, %v5158_v0 }
 0x2b0   : > { %v860_v33 = vpop.f32.mrb[0].mxu1 }
 0x2b1   : > { %v861_v34 = vadd.f32 %v3734_v32, %v860_v33  ;;  %v4094_v35 = vpop.f32.mrb[1].mxu1 }
 0x2b2   : > { %v863_v36 = vpop.f32.mrb[2].mxu1 }
 0x2b3   : > { %v864_v37 = vadd.f32 %v3734_v32, %v863_v36  ;;  %v4095_v38 = vpop.f32.mrb[3].mxu1  ;;  %v867_v39 = vmax.f32 %v861_v34, 0.0 }
 0x2b5   : > { %v868_v40 = vmax.f32 %v864_v37, 0.0 }
 0x2b7   : > { %v5634_v41 = vpack.c.bf16 %v868_v40, %v867_v39  ;;  %v5636_v42 = vadd.f32 %v868_v40, %v867_v39 }
 0x2b9   : > { %4113 = vmatmul.mubr.bf16.vlgmr.msra.gmra.mrb[4].mxu0 %v5634_v41 }
 0x2ba   : > { %4118 = vmatprep.mubr.msk.bf16.mxu0 %vm5159_vm0, %v5158_v0 }
 0x2d0   : > { %v1234_v14 = vpop.f32.mrb[4].mxu1 }
 0x2d1   : > { %v1240_v15 = vpack.c.bf16 %v1234_v14, %v1234_v14  ;;  %v4160_v16 = vpop.f32.mrb[5].mxu1 }
 0x2d2   : > { %v1237_v17 = vpop.f32.mrb[6].mxu1 }
 0x2d3   : > { %v4161_v18 = vpop.f32.mrb[7].mxu1  ;;  %v1351_v19 = vsel %vm1346_vm4, %v1240_v15, 0 }
 0x38c   : > { %v970_v53 = vpop.f32.mrb[4].mxu0 }
 0x38d   : > { %v4114_v54 = vpop.f32.mrb[5].mxu0 }
 0x38e   : > { %v973_v57 = vpop.f32.mrb[6].mxu0 }
 0x38f   : > { %v977_v58 = vpack.c.bf16 %v973_v57, %v970_v53  ;;  %v4115_v59 = vpop.f32.mrb[7].mxu0 }
 0x391   : > { %4117 = vmatpush3.bf16.msra.mxu0 %v977_v58 }
 0x392   : > { %4122 = vmatprep.subr.bf16.mxu0 %v5158_v0 }
 0x394   : > { %4119 = vmatmul.mubr.msk.bf16.vlgmr.msra.gmra.mrb[8].mxu0 %vm985_vm3, %v5663_v60 }
 0x395   : > { %4123 = vmatpush3.bf16.msra.mxu0 %v4669_v61  ;;  %4138 = vmatprep.mubr.msk.bf16.mxu0 %vm5159_vm0, %v5158_v0 }
 0x396   : > { %4124 = vmatprep.subr.bf16.mxu0 %v5158_v0 }
 0x399   : > { %4125 = vmatpush3.bf16.msra.mxu0 %v4671_v62 }
 0x39a   : > { %4126 = vmatprep.subr.bf16.mxu0 %v5158_v0 }
 0x39d   : > { %4127 = vmatpush3.bf16.msra.mxu0 %v4673_v63 }
 0x39e   : > { %4128 = vmatprep.subr.bf16.mxu0 %v5158_v0 }
 0x3a1   : > { %4129 = vmatpush3.bf16.msra.mxu0 %v4675_v1 }
 0x3a2   : > { %4130 = vmatprep.subr.bf16.mxu0 %v5158_v0 }
 0x3a5   : > { %4131 = vmatpush3.bf16.msra.mxu0 %v4677_v2 }
 0x3a6   : > { %4132 = vmatprep.subr.bf16.mxu0 %v5158_v0 }
 0x3a9   : > { %4133 = vmatpush3.bf16.msra.mxu0 %v4679_v3 }
 0x3aa   : > { %4134 = vmatprep.subr.bf16.mxu0 %v5158_v0 }
 0x3ad   : > { %4135 = vmatpush3.bf16.msra.mxu0 %v4680_v4 }
 0x3ae   : > { %4136 = vmatprep.subr.bf16.mxu0 %v5158_v0 }
 0x3b1   : > { %4137 = vmatpush3.bf16.msra.mxu0 %v4681_v5 }
 0x3b2   : > { %4162 = vmatprep.subr.bf16.mxu0 %v5158_v0 }
 0x3b4   : > { %4139 = vmatmul.mubr.bf16.vlgmr.msra.gmra.mrb[12].mxu0 %v5634_v41 }
 0x3b5   : > { %4163 = vmatpush3.bf16.msra.mxu0 %v4682_v6  ;;  %4178 = vmatprep.mubr.msk.bf16.mxu0 %vm5159_vm0, %v5158_v0 }
 0x3b6   : > { %4164 = vmatprep.subr.bf16.mxu0 %v5158_v0 }
 0x3b9   : > { %4165 = vmatpush3.bf16.msra.mxu0 %v4683_v7 }
 0x3ba   : > { %4166 = vmatprep.subr.bf16.mxu0 %v5158_v0 }
 0x3bd   : > { %4167 = vmatpush3.bf16.msra.mxu0 %v4684_v8 }
 0x3be   : > { %4168 = vmatprep.subr.bf16.mxu0 %v5158_v0 }
 0x3c1   : > { %4169 = vmatpush3.bf16.msra.mxu0 %v4685_v9 }
 0x3c2   : > { %4170 = vmatprep.subr.bf16.mxu0 %v5158_v0 }
 0x3c5   : > { %4171 = vmatpush3.bf16.msra.mxu0 %v4686_v10 }
 0x3c6   : > { %4172 = vmatprep.subr.bf16.mxu0 %v5158_v0 }
 0x3c9   : > { %4173 = vmatpush3.bf16.msra.mxu0 %v4687_v11 }
 0x3ca   : > { %4174 = vmatprep.subr.bf16.mxu0 %v5158_v0 }
 0x3cd   : > { %4175 = vmatpush3.bf16.msra.mxu0 %v4688_v12 }
 0x3ce   : > { %4176 = vmatprep.subr.bf16.mxu0 %v5158_v0 }
 0x3d1   : > { %4177 = vmatpush3.bf16.msra.mxu0 %v4689_v13 }
 0x3d2   : > { %4182 = vmatprep.subr.bf16.mxu0 %v5158_v0 }
 0x3d4   : > { %4179 = vmatmul.mubr.bf16.vlgmr.msra.gmra.mrb[16].mxu0 %v5655_v52 }
 0x3d5   : > { %4184 = vmatprep.mubr.msk.bf16.mxu0 %vm5159_vm0, %v5158_v0 }
 0x3da   : > { %4183 = vmatpush3.bf16.xpose.msra.mxu0 %v1351_v19 }
 0x3db   : > { %4206 = vmatprep.subr.bf16.mxu0 %v5158_v0 }
 0x467   : > { %v5694_v20 = vpop.f32.mrb[8].mxu0 }
 0x468   : > { %v4120_v21 = vpop.f32.mrb[9].mxu0 }
 0x469   : > { %v5696_v22 = vpop.f32.mrb[10].mxu0 }
 0x46a   : > { %v4121_v23 = vpop.f32.mrb[11].mxu0 }
 0x487   : > { %v1128_v24 = vpop.f32.mrb[12].mxu0 }
 0x488   : > { %v4140_v25 = vpop.f32.mrb[13].mxu0 }
 0x489   : > { %v1131_v26 = vpop.f32.mrb[14].mxu0 }
 0x48a   : > { %v1135_v27 = vpack.c.bf16 %v1131_v26, %v1128_v24  ;;  %v4141_v28 = vpop.f32.mrb[15].mxu0 }
 0x48c   : > { %4185 = vmatmul.mubr.msk.bf16.vlgmr.msra.gmra.mrb[20].mxu0 %vm1346_vm4, %v1135_v27 }
 0x48d   : > { %4208 = vmatprep.mubr.msk.bf16.mxu0 %vm5159_vm0, %v5158_v0 }
 0x4a7   : > { %v1339_v29 = vpop.f32.mrb[16].mxu0 }
 0x4a8   : > { %v5701_v30 = vpack.c.bf16 %v1339_v29, %v1339_v29  ;;  %v4180_v31 = vpop.f32.mrb[17].mxu0 }
 0x4a9   : > { %v1342_v32 = vpop.f32.mrb[18].mxu0 }
 0x4aa   : > { %v4181_v33 = vpop.f32.mrb[19].mxu0  ;;  %v1423_v34 = vsel %vm707_vm1, %v5701_v30, 0 }
 0x4ab   : > { %4189 = vmatpush3.bf16.msra.mxu1 %v1423_v34 }
 0x4ac   : > { %4194 = vmatprep.subr.bf16.mxu1 %v5158_v0 }
 0x55f   : > { %v1387_v35 = vpop.f32.mrb[20].mxu0 }
 0x560   : > { %v1394_v36 = vmul.f32 0.17677669, %v1387_v35  ;;  %v4186_v37 = vpop.f32.mrb[21].mxu0 }
 0x561   : > { %v1390_v38 = vpop.f32.mrb[22].mxu0 }
 0x562   : > { %v1395_v39 = vmul.f32 0.17677669, %v1390_v38  ;;  %v4187_v40 = vpop.f32.mrb[23].mxu0  ;;  %v1396_v41 = vsel %vm703_vm2, %v1394_v36, -inf }
 0x563   : > { %1397 = vmax.xlane.f32.xlu0 %v1396_v41 }
 0x564   : > { %v1399_v43 = vsel %vm703_vm2, %v1395_v39, -inf }
 0x567   : > { %1400 = vmax.xlane.f32.xlu0 %v1399_v43 }
 0x57d   : > { %1470 = vrot.lane.b32.xlu0 %v1240_v15, %s5160_s20 }
 0x581   : > { %1721 = vrot.lane.b32.xlu0 %v1240_v15, %s5161_s30 }
 0x5f0   : > { %v1398_v44 = vpop.xlane.xlu0 %1397 }
 0x5f1   : > { %v1402_v45 = vsub.f32 %v1394_v36, %v1398_v44 }
 0x5f3   : > { %v1404_v46 = vmul.f32 1.442695, %v1402_v45 }
 0x5f4   : > { %v1401_v47 = vpop.xlane.xlu0 %1400 }
 0x5f5   : > { %4770 = vpow2.f32 %v1404_v46  ;;  %v1403_v48 = vsub.f32 %v1395_v39, %v1401_v47 }
 0x5f7   : > { %v1406_v49 = vmul.f32 1.442695, %v1403_v48 }
 0x5f8   : > { %v1471_v58 = vpop.permute.xlu0 %1470 }
 0x5f9   : > { %4772 = vpow2.f32 %v1406_v49  ;;  %v1476_v5 = vsel %vm1346_vm4, %v1471_v58, 0 }
 0x5fc   : > { %v1722_v3 = vpop.permute.xlu0 %1721 }
 0x5fd   : > { %v1727_v7 = vsel %vm1346_vm4, %v1722_v3, 0 }
 0x5ff   : > { %v4771_v50 = vpop.eup %4770 }
 0x600   : > { %v1408_v52 = vsel %vm703_vm2, %v4771_v50, 0.0 }
 0x601   : > { %1409 = vadd.xlane.f32.xlu1 %v1408_v52 }
 0x603   : > { %v4773_v53 = vpop.eup %4772 }
 0x604   : > { %v1411_v54 = vsel %vm703_vm2, %v4773_v53, 0.0 }
 0x605   : > { %1412 = vadd.xlane.f32.xlu1 %v1411_v54 }
 0x616   : > { %1467 = vrot.lane.b32.xlu1 %v1135_v27, %s5160_s20 }
 0x61a   : > { %1596 = vrot.lane.b32.xlu1 %v1240_v15, %s5162_s23 }
 0x61e   : > { %1594 = vrot.lane.b32.xlu1 %v1135_v27, %s5162_s23 }
 0x622   : > { %1719 = vrot.lane.b32.xlu1 %v1135_v27, %s5161_s30 }
 0x68e   : > { %v1410_v55 = vpop.xlane.xlu1 %1409 }
 0x68f   : > { %4774 = vrcp.f32 %v1410_v55 }
 0x692   : > { %v1413_v56 = vpop.xlane.xlu1 %1412 }
 0x693   : > { %4776 = vrcp.f32 %v1413_v56 }
 0x696   : > { %v1468_v57 = vpop.permute.xlu1 %1467 }
 0x699   : > { %v4775_v61 = vpop.eup %4774 }
 0x69a   : > { %v1597_v59 = vpop.permute.xlu1 %1596  ;;  %v1416_v1 = vmul.f32 %v4775_v61, %v4771_v50 }
 0x69b   : > { %v1602_v62 = vsel %vm1346_vm4, %v1597_v59, 0 }
 0x69c   : > { %4207 = vmatpush3.bf16.xpose.msra.mxu0 %v1602_v62 }
 0x69d   : > { %v4777_v63 = vpop.eup %4776  ;;  %4218 = vmatprep.subr.bf16.mxu0 %v5158_v0 }
 0x69e   : > { %v1417_v2 = vmul.f32 %v4777_v63, %v4773_v53  ;;  %v1595_v6 = vpop.permute.xlu1 %1594 }
 0x6a0   : > { %v1418_v4 = vpack.c.bf16 %v1417_v2, %v1416_v1 }
 0x6a2   : > { %4191 = vmatmul.mubr.msk.bf16.vlgmr.msra.gmra.mrb[8].mxu1 %vm703_vm2, %v1418_v4  ;;  %v1720_v8 = vpop.permute.xlu1 %1719 }
 0x6a3   : > { %4195 = vmatpush3.bf16.xpose.msra.mxu1 %v1476_v5  ;;  %4209 = vmatmul.mubr.msk.bf16.vlgmr.msra.gmra.mrb[24].mxu0 %vm1346_vm4, %v1595_v6 }
 0x6a4   : > { %4219 = vmatpush3.bf16.xpose.msra.mxu0 %v1727_v7  ;;  %4196 = vmatprep.mubr.msk.bf16.mxu1 %vm5159_vm0, %v5158_v0 }
 0x6a5   : > { %4220 = vmatprep.mubr.msk.bf16.mxu0 %vm5159_vm0, %v5158_v0  ;;  %4200 = vmatprep.subr.bf16.mxu1 %v5158_v0 }
 0x6a6   : > { %4230 = vmatprep.subr.bf16.mxu0 %v5158_v0 }
 0x6aa   : > { %4197 = vmatmul.mubr.msk.bf16.vlgmr.msra.gmra.mrb[12].mxu1 %vm1346_vm4, %v1468_v57 }
 0x6ab   : > { %4221 = vmatmul.mubr.msk.bf16.vlgmr.msra.gmra.mrb[28].mxu0 %vm1346_vm4, %v1720_v8  ;;  %4202 = vmatprep.mubr.msk.bf16.mxu1 %vm5159_vm0, %v5158_v0 }
 0x6ac   : > { %4246 = vmatprep.mubr.msk.bf16.mxu0 %vm5159_vm0, %v5158_v0 }
 0x775   : > { %v5734_v9 = vpop.f32.mrb[8].mxu1 }
 0x776   : > { %v4192_v10 = vpop.f32.mrb[9].mxu1  ;;  %v1638_v11 = vpop.f32.mrb[24].mxu0 }
 0x777   : > { %v5736_v12 = vpop.f32.mrb[10].mxu1  ;;  %v4210_v13 = vpop.f32.mrb[25].mxu0  ;;  %v1645_v23 = vmul.f32 0.17677669, %v1638_v11 }
 0x778   : > { %v4193_v14 = vpop.f32.mrb[11].mxu1  ;;  %v1641_v15 = vpop.f32.mrb[26].mxu0 }
 0x779   : > { %v4211_v16 = vpop.f32.mrb[27].mxu0  ;;  %v1646_v34 = vmul.f32 0.17677669, %v1641_v15  ;;  %v1647_v35 = vsel %vm703_vm2, %v1645_v23, -inf }
 0x77b   : > { %v1650_v38 = vsel %vm703_vm2, %v1646_v34, -inf }
 0x77d   : > { %v1512_v17 = vpop.f32.mrb[12].mxu1 }
 0x77e   : > { %v1519_v18 = vmul.f32 0.17677669, %v1512_v17  ;;  %v4198_v19 = vpop.f32.mrb[13].mxu1  ;;  %v1763_v21 = vpop.f32.mrb[28].mxu0 }
 0x77f   : > { %v1515_v24 = vpop.f32.mrb[14].mxu1  ;;  %v4222_v25 = vpop.f32.mrb[29].mxu0  ;;  %v1770_v37 = vmul.f32 0.17677669, %v1763_v21 }
 0x780   : > { %v1520_v26 = vmul.f32 0.17677669, %v1515_v24  ;;  %v4199_v27 = vpop.f32.mrb[15].mxu1  ;;  %v1766_v28 = vpop.f32.mrb[30].mxu0  ;;  %v1521_v29 = vsel %vm703_vm2, %v1519_v18, -inf }
 0x781   : > { %1522 = vmax.xlane.f32.xlu0 %v1521_v29  ;;  %v4223_v31 = vpop.f32.mrb[31].mxu0  ;;  %v1771_v32 = vmul.f32 0.17677669, %v1766_v28  ;;  %v1772_v39 = vsel %vm703_vm2, %v1770_v37, -inf }
 0x782   : > { %v1524_v33 = vsel %vm703_vm2, %v1520_v26, -inf }
 0x783   : > { %1525 = vmax.xlane.f32.xlu1 %v1524_v33  ;;  %v1775_v36 = vsel %vm703_vm2, %v1771_v32, -inf }
 0x785   : > { %1648 = vmax.xlane.f32.xlu0 %v1647_v35 }
 0x787   : > { %1776 = vmax.xlane.f32.xlu1 %v1775_v36 }
 0x789   : > { %1651 = vmax.xlane.f32.xlu0 %v1650_v38 }
 0x78d   : > { %1773 = vmax.xlane.f32.xlu0 %v1772_v39 }
 0x80e   : > { %v1523_v40 = vpop.xlane.xlu0 %1522 }
 0x80f   : > { %v1527_v50 = vsub.f32 %v1519_v18, %v1523_v40 }
 0x810   : > { %v1526_v41 = vpop.xlane.xlu1 %1525 }
 0x811   : > { %v1528_v52 = vsub.f32 %v1520_v26, %v1526_v41  ;;  %v1529_v57 = vmul.f32 1.442695, %v1527_v50  ;;  %v4690_v41 = vld [vmem:[#allocation11] sm:$0xff]  }
 0x812   : > { %v1649_v43 = vpop.xlane.xlu0 %1648  ;;  %4231 = vmatpush3.bf16.msra.mxu0 %v4690_v41  ;;  %v4705_v41 = vld [vmem:[#allocation14 + $0x38] sm:$0xff]  }
 0x813   : > { %v1653_v44 = vsub.f32 %v1645_v23, %v1649_v43  ;;  %v1531_v58 = vmul.f32 1.442695, %v1528_v52  ;;  %v4691_v43 = vld [vmem:[#allocation11 + $0x8] sm:$0xff]   ;;  %4232 = vmatprep.subr.bf16.mxu0 %v5158_v0  ;;  %v4696_v52 = vld [vmem:[#allocation11 + $0x30] sm:$0xff]  }
 0x814   : > { %v1777_v45 = vpop.xlane.xlu1 %1776 }
 0x815   : > { %v1655_v46 = vmul.f32 1.442695, %v1653_v44  ;;  %v1779_v47 = vsub.f32 %v1771_v32, %v1777_v45  ;;  %v4692_v44 = vld [vmem:[#allocation11 + $0x10] sm:$0xff]   ;;  %v4693_v45 = vld [vmem:[#allocation11 + $0x18] sm:$0xff]  }
 0x816   : > { %v1652_v48 = vpop.xlane.xlu0 %1651  ;;  %4233 = vmatpush3.bf16.msra.mxu0 %v4691_v43 }
 0x817   : > { %4778 = vpow2.f32 %v1655_v46  ;;  %v1654_v49 = vsub.f32 %v1646_v34, %v1652_v48  ;;  %v1782_v53 = vmul.f32 1.442695, %v1779_v47  ;;  %4234 = vmatprep.subr.bf16.mxu0 %v5158_v0  ;;  %v4694_v46 = vld [vmem:[#allocation11 + $0x20] sm:$0xff]   ;;  %v4695_v48 = vld [vmem:[#allocation11 + $0x28] sm:$0xff]  }
 0x819   : > { %v1657_v54 = vmul.f32 1.442695, %v1654_v49 }
 0x81a   : > { %v1774_v55 = vpop.xlane.xlu0 %1773  ;;  %4235 = vmatpush3.bf16.msra.mxu0 %v4692_v44 }
 0x81b   : > { %4780 = vpow2.f32 %v1657_v54  ;;  %v1778_v56 = vsub.f32 %v1770_v37, %v1774_v55  ;;  %4236 = vmatprep.subr.bf16.mxu0 %v5158_v0 }
 0x81c   : > { %4782 = vpow2.f32 %v1782_v53 }
 0x81d   : > { %v1780_v59 = vmul.f32 1.442695, %v1778_v56  ;;  %v4697_v56 = vld [vmem:[#allocation11 + $0x38] sm:$0xff]  }
 0x81e   : > { %4237 = vmatpush3.bf16.msra.mxu0 %v4693_v45  ;;  %v4713_v45 = vld [vmem:[#allocation13 + $0x38] sm:$0xff]  }
 0x81f   : > { %4784 = vpow2.f32 %v1780_v59  ;;  %4238 = vmatprep.subr.bf16.mxu0 %v5158_v0 }
 0x820   : > { %4786 = vpow2.f32 %v1529_v57 }
 0x821   : > { %v4779_v61 = vpop.eup %4778  ;;  %4788 = vpow2.f32 %v1531_v58 }
 0x822   : > { %v1659_v62 = vsel %vm703_vm2, %v4779_v61, 0.0  ;;  %4239 = vmatpush3.bf16.msra.mxu0 %v4694_v46 }
 0x823   : > { %1660 = vadd.xlane.f32.xlu0 %v1659_v62  ;;  %4240 = vmatprep.subr.bf16.mxu0 %v5158_v0 }
 0x825   : > { %v4781_v63 = vpop.eup %4780 }
 0x826   : > { %v1662_v1 = vsel %vm703_vm2, %v4781_v63, 0.0  ;;  %v4783_v2 = vpop.eup %4782  ;;  %4241 = vmatpush3.bf16.msra.mxu0 %v4695_v48 }
 0x827   : > { %1663 = vadd.xlane.f32.xlu1 %v1662_v1  ;;  %v1787_v6 = vsel %vm703_vm2, %v4783_v2, 0.0  ;;  %4242 = vmatprep.subr.bf16.mxu0 %v5158_v0 }
 0x829   : > { %v4785_v3 = vpop.eup %4784 }
 0x82a   : > { %v4787_v4 = vpop.eup %4786  ;;  %v1784_v5 = vsel %vm703_vm2, %v4785_v3, 0.0  ;;  %4243 = vmatpush3.bf16.msra.mxu0 %v4696_v52 }
 0x82b   : > { %v4789_v7 = vpop.eup %4788  ;;  %1785 = vadd.xlane.f32.xlu0 %v1784_v5  ;;  %1788 = vadd.xlane.f32.xlu1 %v1787_v6  ;;  %v1533_v8 = vsel %vm703_vm2, %v4787_v4, 0.0  ;;  %v4707_v5 = vld [vmem:[#allocation13 + $0x8] sm:$0xff]   ;;  %v4708_v6 = vld [vmem:[#allocation13 + $0x10] sm:$0xff]  }
 0x82c   : > { %v1536_v10 = vsel %vm703_vm2, %v4789_v7, 0.0  ;;  %4244 = vmatprep.subr.bf16.mxu0 %v5158_v0 }
 0x82e   : > { %4245 = vmatpush3.bf16.msra.mxu0 %v4697_v56  ;;  %v4718_v56 = vld [vmem:[%s6084_s7 + $0x60] sm:$0xff]  }
 0x82f   : > { %1534 = vadd.xlane.f32.xlu0 %v1533_v8  ;;  %1537 = vadd.xlane.f32.xlu1 %v1536_v10  ;;  %v4710_v8 = vld [vmem:[#allocation13 + $0x20] sm:$0xff]   ;;  %v4711_v10 = vld [vmem:[#allocation13 + $0x28] sm:$0xff]  }
 0x830   : > { %4270 = vmatprep.subr.bf16.mxu0 %v5158_v0 }
 0x840   : > { %1670 = vrot.lane.b32.xlu1 %v5701_v30, %s5162_s23 }
 0x844   : > { %1795 = vrot.lane.b32.xlu1 %v5701_v30, %s5161_s30 }
 0x845   : > { %1545 = vrot.lane.b32.xlu0 %v5701_v30, %s5160_s20 }
 0x8b0   : > { %v1661_v11 = vpop.xlane.xlu0 %1660 }
 0x8b4   : > { %v1664_v13 = vpop.xlane.xlu1 %1663 }
 0x8b8   : > { %v1786_v14 = vpop.xlane.xlu0 %1785  ;;  %v1789_v15 = vpop.xlane.xlu1 %1788 }
 0x8bc   : > { %v1535_v16 = vpop.xlane.xlu0 %1534  ;;  %v1538_v17 = vpop.xlane.xlu1 %1537 }
 0x8bd   : > { %4790 = vrcp.f32 %v1535_v16 }
 0x8be   : > { %4792 = vrcp.f32 %v1538_v17 }
 0x8bf   : > { %4794 = vrcp.f32 %v1664_v13 }
 0x8c0   : > { %v1546_v18 = vpop.permute.xlu0 %1545  ;;  %4796 = vrcp.f32 %v1661_v11  ;;  %v1671_v25 = vpop.permute.xlu1 %1670  ;;  %v4712_v11 = vld [vmem:[#allocation13 + $0x30] sm:$0xff]  }
 0x8c1   : > { %v1551_v19 = vsel %vm707_vm1, %v1546_v18, 0  ;;  %4798 = vrcp.f32 %v1786_v14  ;;  %v1676_v28 = vsel %vm707_vm1, %v1671_v25, 0 }
 0x8c2   : > { %4201 = vmatpush3.bf16.msra.mxu1 %v1551_v19  ;;  %4800 = vrcp.f32 %v1789_v15 }
 0x8c3   : > { %4212 = vmatprep.subr.bf16.mxu1 %v5158_v0 }
 0x8c4   : > { %v1796_v33 = vpop.permute.xlu1 %1795 }
 0x8c5   : > { %v1801_v37 = vsel %vm707_vm1, %v1796_v33, 0 }
 0x8c7   : > { %v4791_v21 = vpop.eup %4790 }
 0x8c8   : > { %v4793_v23 = vpop.eup %4792  ;;  %v1541_v24 = vmul.f32 %v4791_v21, %v4787_v4  ;;  %v4706_v4 = vld [vmem:[#allocation13] sm:$0xff]  }
 0x8c9   : > { %v1542_v30 = vmul.f32 %v4793_v23, %v4789_v7  ;;  %v4795_v27 = vpop.eup %4794  ;;  %v4709_v7 = vld [vmem:[#allocation13 + $0x18] sm:$0xff]  }
 0x8ca   : > { %v4797_v29 = vpop.eup %4796  ;;  %v1668_v31 = vmul.f32 %v4795_v27, %v4781_v63 }
 0x8cb   : > { %v1543_v26 = vpack.c.bf16 %v1542_v30, %v1541_v24  ;;  %v1667_v32 = vmul.f32 %v4797_v29, %v4779_v61  ;;  %v4799_v34 = vpop.eup %4798  ;;  %v4698_v29 = vld [vmem:[#allocation14] sm:$0xff]  }
 0x8cc   : > { %v4801_v36 = vpop.eup %4800  ;;  %v1792_v38 = vmul.f32 %v4799_v34, %v4785_v3  ;;  %v4701_v34 = vld [vmem:[#allocation14 + $0x18] sm:$0xff]  }
 0x8cd   : > { %4203 = vmatmul.mubr.msk.bf16.vlgmr.msra.gmra.mrb[16].mxu1 %vm703_vm2, %v1543_v26  ;;  %v1669_v35 = vpack.c.bf16 %v1668_v31, %v1667_v32  ;;  %v1793_v39 = vmul.f32 %v4801_v36, %v4783_v2  ;;  %v4699_v32 = vld [vmem:[#allocation14 + $0x8] sm:$0xff]   ;;  %v4702_v36 = vld [vmem:[#allocation14 + $0x20] sm:$0xff]  }
 0x8ce   : > { %4213 = vmatpush3.bf16.msra.mxu1 %v1676_v28  ;;  %4214 = vmatprep.mubr.msk.bf16.mxu1 %vm5159_vm0, %v5158_v0 }
 0x8cf   : > { %4224 = vmatprep.subr.bf16.mxu1 %v5158_v0  ;;  %v1794_v40 = vpack.c.bf16 %v1793_v39, %v1792_v38  ;;  %v4703_v38 = vld [vmem:[#allocation14 + $0x28] sm:$0xff]  }
 0x8d5   : > { %4215 = vmatmul.mubr.msk.bf16.vlgmr.msra.gmra.mrb[20].mxu1 %vm703_vm2, %v1669_v35 }
 0x8d6   : > { %4225 = vmatpush3.bf16.msra.mxu1 %v1801_v37  ;;  %4226 = vmatprep.mubr.msk.bf16.mxu1 %vm5159_vm0, %v5158_v0 }
 0x8d7   : > { %4250 = vmatprep.subr.bf16.mxu1 %v5158_v0 }
 0x8dd   : > { %4227 = vmatmul.mubr.msk.bf16.vlgmr.msra.gmra.mrb[24].mxu1 %vm703_vm2, %v1794_v40  ;;  %v4704_v40 = vld [vmem:[#allocation14 + $0x30] sm:$0xff]  }
 0x8de   : > { %4266 = vmatprep.mubr.msk.bf16.mxu1 %vm5159_vm0, %v5158_v0  ;;  %4251 = vmatpush3.bf16.msra.mxu1 %v4706_v4 }
 0x8df   : > { %4252 = vmatprep.subr.bf16.mxu1 %v5158_v0 }
 0x8e2   : > { %4253 = vmatpush3.bf16.msra.mxu1 %v4707_v5 }
 0x8e3   : > { %4254 = vmatprep.subr.bf16.mxu1 %v5158_v0 }
 0x8e6   : > { %4255 = vmatpush3.bf16.msra.mxu1 %v4708_v6 }
 0x8e7   : > { %4256 = vmatprep.subr.bf16.mxu1 %v5158_v0 }
 0x8ea   : > { %4257 = vmatpush3.bf16.msra.mxu1 %v4709_v7 }
 0x8eb   : > { %4258 = vmatprep.subr.bf16.mxu1 %v5158_v0 }
 0x8ee   : > { %4259 = vmatpush3.bf16.msra.mxu1 %v4710_v8 }
 0x8ef   : > { %4260 = vmatprep.subr.bf16.mxu1 %v5158_v0 }
 0x8f2   : > { %4261 = vmatpush3.bf16.msra.mxu1 %v4711_v10 }
 0x8f3   : > { %4262 = vmatprep.subr.bf16.mxu1 %v5158_v0 }
 0x8f6   : > { %4263 = vmatpush3.bf16.msra.mxu1 %v4712_v11 }
 0x8f7   : > { %4264 = vmatprep.subr.bf16.mxu1 %v5158_v0 }
 0x8fa   : > { %4265 = vmatpush3.bf16.msra.mxu1 %v4713_v45  ;;  %v4742_v45 = vld [vmem:[#allocation8 + $0x60] sm:$0xff]  }
 0x8fb   : > { %4290 = vmatprep.subr.bf16.mxu1 %v5158_v0 }
 0x9a0   : > { %v1587_v47 = vpop.f32.mrb[16].mxu1 }
 0x9a1   : > { %v4204_v49 = vpop.f32.mrb[17].mxu1 }
 0x9a2   : > { %v1590_v50 = vpop.f32.mrb[18].mxu1  ;;  %v4714_v49 = vld [vmem:[%s6084_s7 + $0x40] sm:$0xff]  }
 0x9a3   : > { %v4620_v53 = vpack.i.bf16 %v1590_v50, %v1587_v47  ;;  %v4205_v54 = vpop.f32.mrb[19].mxu1 }
 0x9a4   : > { %v4716_v54 = vld [vmem:[%s6084_s7 + $0x50] sm:$0xff]  }
 0x9a5   : > { %4621 = vrot.lane.b32.xlu1 %v4620_v53, %s5161_s30  ;;  %v4715_v53 = vld [vmem:[%s6084_s7 + $0x48] sm:$0xff]  }
 0x9a8   : > { %v1712_v55 = vpop.f32.mrb[20].mxu1 }
 0x9a9   : > { %v4216_v57 = vpop.f32.mrb[21].mxu1 }
 0x9aa   : > { %v1715_v58 = vpop.f32.mrb[22].mxu1  ;;  %v4719_v57 = vld [vmem:[%s6084_s7 + $0x68] sm:$0xff]  }
 0x9ab   : > { %v4625_v59 = vpack.i.bf16 %v1715_v58, %v1712_v55  ;;  %v4217_v61 = vpop.f32.mrb[23].mxu1  ;;  %v4717_v55 = vld [vmem:[%s6084_s7 + $0x58] sm:$0xff]  }
 0x9ad   : > { %4626 = vrot.lane.b32.xlu0 %v4625_v59, %s5162_s23 }
 0x9b0   : > { %v1837_v62 = vpop.f32.mrb[24].mxu1 }
 0x9b1   : > { %v4228_v63 = vpop.f32.mrb[25].mxu1 }
 0x9b2   : > { %v1840_v1 = vpop.f32.mrb[26].mxu1  ;;  %v4720_v63 = vld [vmem:[%s6084_s7 + $0x70] sm:$0xff]  }
 0x9b3   : > { %v4630_v2 = vpack.i.bf16 %v1840_v1, %v1837_v62  ;;  %v4229_v3 = vpop.f32.mrb[27].mxu1  ;;  %v4721_v1 = vld [vmem:[%s6084_s7 + $0x78] sm:$0xff]  }
 0x9b5   : > { %4631 = vrot.lane.b32.xlu1 %v4630_v2, %s5160_s20  ;;  %v3751_v2 = vld [vmem:[%s6135_s6] ss:$0 sm:$0xff] }
 0x9b6   : > { %v1024_v3 = vadd.f32 %v3751_v2, %v5694_v20  ;;  %v1027_v5 = vadd.f32 %v3751_v2, %v5696_v22  ;;  %v4724_v20 = vld [vmem:[#allocation7 + $0x50] sm:$0xff]   ;;  %v4725_v22 = vld [vmem:[#allocation7 + $0x58] sm:$0xff]  }
 0xa17   : > { %v4622_v13 = vpop.permute.xlu1 %4621 }
 0xa18   : > { %v4624_v15 = vunpack.i.h.bf16 %v4622_v13  ;;  %v4623_v16 = vunpack.i.l.bf16 %v4622_v13 }
 0xa1a   : > { %v1869_v21 = vsel %vm1346_vm4, %v5736_v12, %v4624_v15  ;;  %v1868_v23 = vsel %vm1346_vm4, %v5734_v9, %v4623_v16  ;;  %v2093_v9 = vrot.slane %v5636_v42, 4  ;;  %v4700_v12 = vld [vmem:[#allocation14 + $0x10] sm:$0xff]   ;;  %v4722_v15 = vld [vmem:[#allocation7 + $0x40] sm:$0xff]  }
 0xa1c   : > { %v2094_v33 = vadd.f32 %v2093_v9, %v5636_v42  ;;  %v4734_v9 = vld [vmem:[#allocation10 + $0x60] sm:$0xff]  }
 0xa1e   : > { %v2095_v35 = vrot.slane %v2094_v33, 2 }
 0xa1f   : > { %v4627_v14 = vpop.permute.xlu0 %4626 }
 0xa20   : > { %v4629_v17 = vunpack.i.h.bf16 %v4627_v14  ;;  %v4628_v18 = vunpack.i.l.bf16 %v4627_v14  ;;  %v2096_v37 = vadd.f32 %v2095_v35, %v2094_v33  ;;  %v4736_v33 = vld [vmem:[#allocation10 + $0x70] sm:$0xff]  }
 0xa22   : > { %v1871_v25 = vsel %vm1870_vm5, %v1868_v23, %v4628_v18  ;;  %v1872_v26 = vsel %vm1870_vm5, %v1869_v21, %v4629_v17  ;;  %v2097_v39 = vrot.slane %v2096_v37, 1  ;;  %v4723_v17 = vld [vmem:[#allocation7 + $0x48] sm:$0xff]   ;;  %v4726_v18 = vld [vmem:[#allocation7 + $0x60] sm:$0xff]   ;;  %v4728_v21 = vld [vmem:[#allocation7 + $0x70] sm:$0xff]  }
 0xa23   : > { %v4729_v23 = vld [vmem:[#allocation7 + $0x78] sm:$0xff]  }
 0xa24   : > { %v2098_v42 = vadd.f32 %v2097_v39, %v2096_v37 }
 0xa26   : > { %v2100_v43 = vmul.f32 0.0625, %v2098_v42  ;;  %v4738_v42 = vld [vmem:[#allocation8 + $0x40] sm:$0xff]  }
 0xa27   : > { %v4632_v19 = vpop.permute.xlu1 %4631 }
 0xa28   : > { %v4634_v24 = vunpack.i.h.bf16 %v4632_v19  ;;  %v4633_v30 = vunpack.i.l.bf16 %v4632_v19  ;;  %v2117_v44 = vpack.c.bf16 %v2100_v43, %v2100_v43  ;;  %v4727_v19 = vld [vmem:[#allocation7 + $0x68] sm:$0xff]   ;;  %v4740_v43 = vld [vmem:[#allocation8 + $0x50] sm:$0xff]  }
 0xa2a   : > { %v1874_v27 = vsel %vm1873_vm6, %v1871_v25, %v4633_v30  ;;  %v1875_v28 = vsel %vm1873_vm6, %v1872_v26, %v4634_v24  ;;  %v2206_v24 = vlaneseq  ;;  %v4730_v30 = vld [vmem:[#allocation10 + $0x40] sm:$0xff]   ;;  %v4731_v26 = vld [vmem:[#allocation10 + $0x48] sm:$0xff]  }
 0xa2b   : > { %v1892_v31 = vpack.c.bf16 %v1875_v28, %v1874_v27  ;;  %v4732_v28 = vld [vmem:[#allocation10 + $0x50] sm:$0xff]  }
 0xa2c   : > { %v2207_v25 = vshrl.u32 %v2206_v24, 7 }
 0xa2d   : > { %4247 = vmatmul.mubr.bf16.vlgmr.msra.gmra.mrb[32].mxu0 %v1892_v31  ;;  %v4733_v31 = vld [vmem:[#allocation10 + $0x58] sm:$0xff]  }
 0xa2e   : > { %4271 = vmatpush3.bf16.msra.mxu0 %v4698_v29  ;;  %4286 = vmatprep.mubr.msk.bf16.mxu0 %vm5159_vm0, %v5158_v0  ;;  %v2208_v27 = vsub.s32 0, %v2207_v25 }
 0xa2f   : > { %4272 = vmatprep.subr.bf16.mxu0 %v5158_v0 }
 0xa32   : > { %4273 = vmatpush3.bf16.msra.mxu0 %v4699_v32 }
 0xa33   : > { %4274 = vmatprep.subr.bf16.mxu0 %v5158_v0 }
 0xa36   : > { %4275 = vmatpush3.bf16.msra.mxu0 %v4700_v12  ;;  %v4735_v12 = vld [vmem:[#allocation10 + $0x68] sm:$0xff]  }
 0xa37   : > { %4276 = vmatprep.subr.bf16.mxu0 %v5158_v0 }
 0xa3a   : > { %4277 = vmatpush3.bf16.msra.mxu0 %v4701_v34  ;;  %v4737_v34 = vld [vmem:[#allocation10 + $0x78] sm:$0xff]  }
 0xa3b   : > { %4278 = vmatprep.subr.bf16.mxu0 %v5158_v0 }
 0xa3e   : > { %4279 = vmatpush3.bf16.msra.mxu0 %v4702_v36 }
 0xa3f   : > { %4280 = vmatprep.subr.bf16.mxu0 %v5158_v0 }
 0xa42   : > { %4281 = vmatpush3.bf16.msra.mxu0 %v4703_v38 }
 0xa43   : > { %4282 = vmatprep.subr.bf16.mxu0 %v5158_v0 }
 0xa46   : > { %4283 = vmatpush3.bf16.msra.mxu0 %v4704_v40 }
 0xa47   : > { %4284 = vmatprep.subr.bf16.mxu0 %v5158_v0 }
 0xa4a   : > { %4285 = vmatpush3.bf16.msra.mxu0 %v4705_v41  ;;  %v4739_v41 = vld [vmem:[#allocation8 + $0x48] sm:$0xff]  }
 0xa4b   : > { %4310 = vmatprep.subr.bf16.mxu0 %v5158_v0 }
 0xa4d   : > { %4287 = vmatmul.mubr.bf16.vlgmr.msra.gmra.mrb[36].mxu0 %v2117_v44  ;;  %v4741_v44 = vld [vmem:[#allocation8 + $0x58] sm:$0xff]  }
 0xa4e   : > { %4312 = vmatprep.mubr.msk.bf16.mxu0 %vm5159_vm0, %v5158_v0 }
 0xb00   : > { %v1975_v46 = vpop.f32.mrb[32].mxu0 }
 0xb01   : > { %v4248_v47 = vpop.f32.mrb[33].mxu0 }
 0xb02   : > { %v1978_v48 = vpop.f32.mrb[34].mxu0 }
 0xb03   : > { %v1998_v50 = vpack.c.bf16 %v1978_v48, %v1975_v46  ;;  %v4249_v52 = vpop.f32.mrb[35].mxu0  ;;  %v4744_v46 = vld [vmem:[#allocation8 + $0x70] sm:$0xff]  }
 0xb05   : > { %4267 = vmatmul.mubr.bf16.vlgmr.msra.gmra.mrb[28].mxu1 %v1998_v50 }
 0xb06   : > { %4291 = vmatpush3.bf16.msra.mxu1 %v4714_v49  ;;  %4306 = vmatprep.mubr.msk.bf16.mxu1 %vm5159_vm0, %v5158_v0  ;;  %v4745_v49 = vld [vmem:[#allocation8 + $0x78] sm:$0xff]  }
 0xb07   : > { %4292 = vmatprep.subr.bf16.mxu1 %v5158_v0 }
 0xb0a   : > { %4293 = vmatpush3.bf16.msra.mxu1 %v4715_v53 }
 0xb0b   : > { %4294 = vmatprep.subr.bf16.mxu1 %v5158_v0 }
 0xb0e   : > { %4295 = vmatpush3.bf16.msra.mxu1 %v4716_v54 }
 0xb0f   : > { %4296 = vmatprep.subr.bf16.mxu1 %v5158_v0 }
 0xb12   : > { %4297 = vmatpush3.bf16.msra.mxu1 %v4717_v55 }
 0xb13   : > { %4298 = vmatprep.subr.bf16.mxu1 %v5158_v0 }
 0xb16   : > { %4299 = vmatpush3.bf16.msra.mxu1 %v4718_v56 }
 0xb17   : > { %4300 = vmatprep.subr.bf16.mxu1 %v5158_v0 }
 0xb1a   : > { %4301 = vmatpush3.bf16.msra.mxu1 %v4719_v57 }
 0xb1b   : > { %4302 = vmatprep.subr.bf16.mxu1 %v5158_v0 }
 0xb1e   : > { %4303 = vmatpush3.bf16.msra.mxu1 %v4720_v63 }
 0xb1f   : > { %4304 = vmatprep.subr.bf16.mxu1 %v5158_v0 }
 0xb20   : > { %v2200_v58 = vpop.f32.mrb[36].mxu0 }
 0xb21   : > { %v4288_v59 = vpop.f32.mrb[37].mxu0  ;;  %v2209_v29 = vrot.slane %v2200_v58, %v2208_v27 }
 0xb22   : > { %v2203_v61 = vpop.f32.mrb[38].mxu0  ;;  %4305 = vmatpush3.bf16.msra.mxu1 %v4721_v1 }
 0xb23   : > { %v4289_v62 = vpop.f32.mrb[39].mxu0  ;;  %4316 = vmatprep.subr.bf16.mxu1 %v5158_v0  ;;  %v2210_v32 = vadd.f32 %v2209_v29, %v5651_v51 }
 0xb25   : > { %4802 = vtanh.f32 %v2210_v32 }
 0xb2f   : > { %v4803_v35 = vpop.eup %4802 }
 0xb30   : > { %v2213_v51 = vpack.c.bf16 %v4803_v35, %v4803_v35 }
 0xbd8   : > { %v2081_v4 = vpop.f32.mrb[28].mxu1 }
 0xbd9   : > { %v2088_v6 = vadd.f32 %v2081_v4, %v1024_v3  ;;  %v4268_v7 = vpop.f32.mrb[29].mxu1 }
 0xbda   : > { %v2084_v8 = vpop.f32.mrb[30].mxu1 }
 0xbdb   : > { %v2089_v10 = vadd.f32 %v2084_v8, %v1027_v5  ;;  %v4269_v11 = vpop.f32.mrb[31].mxu1  ;;  %v2090_v13 = vmax.f32 %v2088_v6, 0.0 }
 0xbdd   : > { %v2091_v14 = vmax.f32 %v2089_v10, 0.0 }
 0xbdf   : > { %v2212_v16 = vpack.c.bf16 %v2091_v14, %v2090_v13 }
 0xbe1   : > { %4307 = vmatmul.mubr.bf16.vlgmr.msra.gmra.mrb[32].mxu1 %v2212_v16 }
 0xbe2   : > { %4317 = vmatpush3.bf16.msra.mxu1 %v4722_v15  ;;  %4332 = vmatprep.mubr.msk.bf16.mxu1 %vm5159_vm0, %v5158_v0 }
 0xbe3   : > { %4318 = vmatprep.subr.bf16.mxu1 %v5158_v0 }
 0xbe6   : > { %4319 = vmatpush3.bf16.msra.mxu1 %v4723_v17 }
 0xbe7   : > { %4320 = vmatprep.subr.bf16.mxu1 %v5158_v0 }
 0xbea   : > { %4321 = vmatpush3.bf16.msra.mxu1 %v4724_v20 }
 0xbeb   : > { %4322 = vmatprep.subr.bf16.mxu1 %v5158_v0 }
 0xbee   : > { %4323 = vmatpush3.bf16.msra.mxu1 %v4725_v22 }
 0xbef   : > { %4324 = vmatprep.subr.bf16.mxu1 %v5158_v0 }
 0xbf2   : > { %4325 = vmatpush3.bf16.msra.mxu1 %v4726_v18 }
 0xbf3   : > { %4326 = vmatprep.subr.bf16.mxu1 %v5158_v0 }
 0xbf6   : > { %4327 = vmatpush3.bf16.msra.mxu1 %v4727_v19 }
 0xbf7   : > { %4328 = vmatprep.subr.bf16.mxu1 %v5158_v0 }
 0xbfa   : > { %4329 = vmatpush3.bf16.msra.mxu1 %v4728_v21 }
 0xbfb   : > { %4330 = vmatprep.subr.bf16.mxu1 %v5158_v0 }
 0xbfe   : > { %4331 = vmatpush3.bf16.msra.mxu1 %v4729_v23 }
 0xbff   : > { %4356 = vmatprep.subr.bf16.mxu1 %v5158_v0 }
 0xc01   : > { %4333 = vmatmul.mubr.bf16.vlgmr.msra.gmra.mrb[36].mxu1 %v2212_v16 }
 0xc02   : > { %4357 = vmatpush3.bf16.msra.mxu1 %v4730_v30  ;;  %4372 = vmatprep.mubr.msk.bf16.mxu1 %vm5159_vm0, %v5158_v0 }
 0xc03   : > { %4358 = vmatprep.subr.bf16.mxu1 %v5158_v0 }
 0xc06   : > { %4359 = vmatpush3.bf16.msra.mxu1 %v4731_v26 }
 0xc07   : > { %4360 = vmatprep.subr.bf16.mxu1 %v5158_v0 }
 0xc0a   : > { %4361 = vmatpush3.bf16.msra.mxu1 %v4732_v28 }
 0xc0b   : > { %4362 = vmatprep.subr.bf16.mxu1 %v5158_v0 }
 0xc0e   : > { %4363 = vmatpush3.bf16.msra.mxu1 %v4733_v31 }
 0xc0f   : > { %4364 = vmatprep.subr.bf16.mxu1 %v5158_v0 }
 0xc12   : > { %4365 = vmatpush3.bf16.msra.mxu1 %v4734_v9 }
 0xc13   : > { %4366 = vmatprep.subr.bf16.mxu1 %v5158_v0 }
 0xc16   : > { %4367 = vmatpush3.bf16.msra.mxu1 %v4735_v12 }
 0xc17   : > { %4368 = vmatprep.subr.bf16.mxu1 %v5158_v0 }
 0xc1a   : > { %4369 = vmatpush3.bf16.msra.mxu1 %v4736_v33 }
 0xc1b   : > { %4370 = vmatprep.subr.bf16.mxu1 %v5158_v0 }
 0xc1e   : > { %4371 = vmatpush3.bf16.msra.mxu1 %v4737_v34 }
 0xc1f   : > { %4400 = vmatprep.subr.bf16.mxu1 %v5158_v0 }
 0xc21   : > { %4373 = vmatmul.mubr.bf16.vlgmr.msra.gmra.mrb[40].mxu1 %v2213_v51 }
 0xc22   : > { %4402 = vmatprep.mubr.msk.bf16.mxu1 %vm5159_vm0, %v5158_v0 }
 0xcb4   : > { %v2313_v36 = vpop.f32.mrb[32].mxu1 }
 0xcb5   : > { %v4308_v37 = vpop.f32.mrb[33].mxu1 }
 0xcb6   : > { %v2316_v38 = vpop.f32.mrb[34].mxu1 }
 0xcb7   : > { %v2320_v39 = vpack.c.bf16 %v2316_v38, %v2313_v36  ;;  %v4309_v40 = vpop.f32.mrb[35].mxu1 }
 0xcb9   : > { %4311 = vmatpush3.bf16.msra.mxu0 %v2320_v39 }
 0xcba   : > { %4336 = vmatprep.subr.bf16.mxu0 %v5158_v0 }
 0xcbc   : > { %4313 = vmatmul.mubr.msk.bf16.vlgmr.msra.gmra.mrb[40].mxu0 %vm985_vm3, %v5663_v60  ;;  %v4743_v60 = vld [vmem:[#allocation8 + $0x68] sm:$0xff]  }
 0xcbd   : > { %4337 = vmatpush3.bf16.msra.mxu0 %v4738_v42  ;;  %4352 = vmatprep.mubr.msk.bf16.mxu0 %vm5159_vm0, %v5158_v0 }
 0xcbe   : > { %4338 = vmatprep.subr.bf16.mxu0 %v5158_v0 }
 0xcc1   : > { %4339 = vmatpush3.bf16.msra.mxu0 %v4739_v41 }
 0xcc2   : > { %4340 = vmatprep.subr.bf16.mxu0 %v5158_v0 }
 0xcc5   : > { %4341 = vmatpush3.bf16.msra.mxu0 %v4740_v43 }
 0xcc6   : > { %4342 = vmatprep.subr.bf16.mxu0 %v5158_v0 }
 0xcc9   : > { %4343 = vmatpush3.bf16.msra.mxu0 %v4741_v44 }
 0xcca   : > { %4344 = vmatprep.subr.bf16.mxu0 %v5158_v0 }
 0xccd   : > { %4345 = vmatpush3.bf16.msra.mxu0 %v4742_v45 }
 0xcce   : > { %4346 = vmatprep.subr.bf16.mxu0 %v5158_v0 }
 0xcd1   : > { %4347 = vmatpush3.bf16.msra.mxu0 %v4743_v60 }
 0xcd2   : > { %4348 = vmatprep.subr.bf16.mxu0 %v5158_v0 }
 0xcd4   : > { %v2469_v47 = vpop.f32.mrb[36].mxu1 }
 0xcd5   : > { %v4334_v48 = vpop.f32.mrb[37].mxu1  ;;  %4349 = vmatpush3.bf16.msra.mxu0 %v4744_v46 }
 0xcd6   : > { %v2472_v50 = vpop.f32.mrb[38].mxu1  ;;  %4350 = vmatprep.subr.bf16.mxu0 %v5158_v0 }
 0xcd7   : > { %v2476_v52 = vpack.c.bf16 %v2472_v50, %v2469_v47  ;;  %v4335_v53 = vpop.f32.mrb[39].mxu1 }
 0xcd9   : > { %4351 = vmatpush3.bf16.msra.mxu0 %v4745_v49 }
 0xcda   : > { %4376 = vmatprep.subr.bf16.mxu0 %v5158_v0 }
 0xcdc   : > { %4353 = vmatmul.mubr.bf16.vlgmr.msra.gmra.mrb[44].mxu0 %v2213_v51 }
 0xcdd   : > { %4378 = vmatprep.mubr.msk.bf16.mxu0 %vm5159_vm0, %v5158_v0 }
 0xcf4   : > { %v2682_v54 = vpop.f32.mrb[40].mxu1 }
 0xcf5   : > { %v4374_v55 = vpop.f32.mrb[41].mxu1  ;;  %v5891_v2 = vpack.c.bf16 %v2682_v54, %v2682_v54 }
 0xcf6   : > { %v2685_v56 = vpop.f32.mrb[42].mxu1 }
 0xcf7   : > { %v4375_v57 = vpop.f32.mrb[43].mxu1  ;;  %v2765_v3 = vsel %vm707_vm1, %v5891_v2, 0 }
 0xdaf   : > { %v2576_v58 = vpop.f32.mrb[44].mxu0 }
 0xdb0   : > { %v2582_v59 = vpack.c.bf16 %v2576_v58, %v2576_v58  ;;  %v4354_v61 = vpop.f32.mrb[45].mxu0 }
 0xdb1   : > { %v2579_v62 = vpop.f32.mrb[46].mxu0 }
 0xdb2   : > { %v4355_v63 = vpop.f32.mrb[47].mxu0  ;;  %v2693_v1 = vsel %vm1346_vm4, %v2582_v59, 0 }
 0xdb3   : > { %4377 = vmatpush3.bf16.xpose.msra.mxu0 %v2693_v1 }
 0xdb4   : > { %4382 = vmatprep.subr.bf16.mxu0 %v5158_v0 }
 0xdba   : > { %4379 = vmatmul.mubr.msk.bf16.vlgmr.msra.gmra.mrb[48].mxu0 %vm1346_vm4, %v2476_v52 }
 0xdbb   : > { %4383 = vmatpush3.bf16.msra.mxu0 %v2765_v3  ;;  %4384 = vmatprep.mubr.msk.bf16.mxu0 %vm5159_vm0, %v5158_v0 }
 0xdbc   : > { %4388 = vmatprep.subr.bf16.mxu0 %v5158_v0 }
 0xe8d   : > { %v2729_v4 = vpop.f32.mrb[48].mxu0 }
 0xe8e   : > { %v2736_v5 = vmul.f32 0.17677669, %v2729_v4  ;;  %v4380_v6 = vpop.f32.mrb[49].mxu0 }
 0xe8f   : > { %v2732_v7 = vpop.f32.mrb[50].mxu0 }
 0xe90   : > { %v2737_v8 = vmul.f32 0.17677669, %v2732_v7  ;;  %v4381_v10 = vpop.f32.mrb[51].mxu0  ;;  %v2738_v11 = vsel %vm703_vm2, %v2736_v5, -inf }
 0xe91   : > { %2739 = vmax.xlane.f32.xlu0 %v2738_v11 }
 0xe92   : > { %v2741_v13 = vsel %vm703_vm2, %v2737_v8, -inf }
 0xe93   : > { %2742 = vmax.xlane.f32.xlu1 %v2741_v13 }
 0xea4   : > { %2809 = vrot.lane.b32.xlu1 %v2476_v52, %s5160_s20 }
 0xea8   : > { %2938 = vrot.lane.b32.xlu1 %v2582_v59, %s5162_s23 }
 0xeac   : > { %2936 = vrot.lane.b32.xlu1 %v2476_v52, %s5162_s23 }
 0xeb0   : > { %3061 = vrot.lane.b32.xlu1 %v2476_v52, %s5161_s30 }
 0xf1e   : > { %v2740_v14 = vpop.xlane.xlu0 %2739 }
 0xf1f   : > { %v2744_v15 = vsub.f32 %v2736_v5, %v2740_v14 }
 0xf20   : > { %v2743_v16 = vpop.xlane.xlu1 %2742 }
 0xf21   : > { %v2746_v17 = vmul.f32 1.442695, %v2744_v15  ;;  %v2745_v20 = vsub.f32 %v2737_v8, %v2743_v16 }
 0xf23   : > { %4804 = vpow2.f32 %v2746_v17  ;;  %v2748_v22 = vmul.f32 1.442695, %v2745_v20 }
 0xf24   : > { %v2810_v18 = vpop.permute.xlu1 %2809 }
 0xf25   : > { %4806 = vpow2.f32 %v2748_v22 }
 0xf28   : > { %v2939_v19 = vpop.permute.xlu1 %2938 }
 0xf29   : > { %v2944_v21 = vsel %vm1346_vm4, %v2939_v19, 0 }
 0xf2a   : > { %4401 = vmatpush3.bf16.xpose.msra.mxu1 %v2944_v21 }
 0xf2b   : > { %4412 = vmatprep.subr.bf16.mxu1 %v5158_v0 }
 0xf2c   : > { %v2937_v25 = vpop.permute.xlu1 %2936 }
 0xf2d   : > { %v4805_v23 = vpop.eup %4804 }
 0xf2e   : > { %v2750_v24 = vsel %vm703_vm2, %v4805_v23, 0.0 }
 0xf2f   : > { %v4807_v30 = vpop.eup %4806  ;;  %2751 = vadd.xlane.f32.xlu0 %v2750_v24 }
 0xf30   : > { %v2753_v26 = vsel %vm703_vm2, %v4807_v30, 0.0  ;;  %v3062_v51 = vpop.permute.xlu1 %3061 }
 0xf31   : > { %4403 = vmatmul.mubr.msk.bf16.vlgmr.msra.gmra.mrb[44].mxu1 %vm1346_vm4, %v2937_v25 }
 0xf32   : > { %4414 = vmatprep.mubr.msk.bf16.mxu1 %vm5159_vm0, %v5158_v0 }
 0xf33   : > { %2754 = vadd.xlane.f32.xlu0 %v2753_v26 }
 0xf49   : > { %2812 = vrot.lane.b32.xlu0 %v2582_v59, %s5160_s20 }
 0xf4d   : > { %3063 = vrot.lane.b32.xlu0 %v2582_v59, %s5161_s30 }
 0xfbc   : > { %v2752_v27 = vpop.xlane.xlu0 %2751 }
 0xfbd   : > { %4808 = vrcp.f32 %v2752_v27 }
 0xfc0   : > { %v2755_v28 = vpop.xlane.xlu0 %2754 }
 0xfc1   : > { %4810 = vrcp.f32 %v2755_v28 }
 0xfc4   : > { %v2813_v29 = vpop.permute.xlu0 %2812 }
 0xfc5   : > { %v2818_v36 = vsel %vm1346_vm4, %v2813_v29, 0 }
 0xfc7   : > { %v4809_v32 = vpop.eup %4808 }
 0xfc8   : > { %v3064_v31 = vpop.permute.xlu0 %3063  ;;  %v2758_v33 = vmul.f32 %v4809_v32, %v4805_v23 }
 0xfc9   : > { %v3069_v9 = vsel %vm1346_vm4, %v3064_v31, 0 }
 0xfca   : > { %4413 = vmatpush3.bf16.xpose.msra.mxu1 %v3069_v9 }
 0xfcb   : > { %v4811_v12 = vpop.eup %4810  ;;  %4424 = vmatprep.subr.bf16.mxu1 %v5158_v0 }
 0xfcc   : > { %v2759_v34 = vmul.f32 %v4811_v12, %v4807_v30 }
 0xfce   : > { %v2760_v35 = vpack.c.bf16 %v2759_v34, %v2758_v33 }
 0xfd0   : > { %4385 = vmatmul.mubr.msk.bf16.vlgmr.msra.gmra.mrb[52].mxu0 %vm703_vm2, %v2760_v35 }
 0xfd1   : > { %4389 = vmatpush3.bf16.xpose.msra.mxu0 %v2818_v36  ;;  %4415 = vmatmul.mubr.msk.bf16.vlgmr.msra.gmra.mrb[48].mxu1 %vm1346_vm4, %v3062_v51 }
 0xfd2   : > { %4390 = vmatprep.mubr.msk.bf16.mxu0 %vm5159_vm0, %v5158_v0  ;;  %4394 = vmatprep.subr.bf16.mxu0 %v5158_v0 }
 0xfd3   : > { %4440 = vmatprep.mubr.msk.bf16.mxu1 %vm5159_vm0, %v5158_v0 }
 0xfd8   : > { %4391 = vmatmul.mubr.msk.bf16.vlgmr.msra.gmra.mrb[56].mxu0 %vm1346_vm4, %v2810_v18 }
 0xfd9   : > { %4396 = vmatprep.mubr.msk.bf16.mxu0 %vm5159_vm0, %v5158_v0 }
0x1004   : > { %v2980_v37 = vpop.f32.mrb[44].mxu1 }
0x1005   : > { %v4404_v38 = vpop.f32.mrb[45].mxu1  ;;  %v2987_v53 = vmul.f32 0.17677669, %v2980_v37 }
0x1006   : > { %v2983_v39 = vpop.f32.mrb[46].mxu1 }
0x1007   : > { %v4405_v40 = vpop.f32.mrb[47].mxu1  ;;  %v2988_v59 = vmul.f32 0.17677669, %v2983_v39  ;;  %v2989_v61 = vsel %vm703_vm2, %v2987_v53, -inf }
0x1009   : > { %v2992_v1 = vsel %vm703_vm2, %v2988_v59, -inf }
0x10a3   : > { %v5927_v42 = vpop.f32.mrb[52].mxu0 }
0x10a4   : > { %v4386_v41 = vpop.f32.mrb[53].mxu0  ;;  %v3105_v43 = vpop.f32.mrb[48].mxu1 }
0x10a5   : > { %v5929_v44 = vpop.f32.mrb[54].mxu0  ;;  %v4416_v45 = vpop.f32.mrb[49].mxu1  ;;  %v3112_v63 = vmul.f32 0.17677669, %v3105_v43 }
0x10a6   : > { %v4387_v60 = vpop.f32.mrb[55].mxu0  ;;  %v3108_v46 = vpop.f32.mrb[50].mxu1 }
0x10a7   : > { %v4417_v47 = vpop.f32.mrb[51].mxu1  ;;  %v3113_v57 = vmul.f32 0.17677669, %v3108_v46  ;;  %v3114_v3 = vsel %vm703_vm2, %v3112_v63, -inf }
0x10a9   : > { %v3117_v62 = vsel %vm703_vm2, %v3113_v57, -inf }
0x10ab   : > { %v2854_v48 = vpop.f32.mrb[56].mxu0 }
0x10ac   : > { %v2861_v49 = vmul.f32 0.17677669, %v2854_v48  ;;  %v4392_v50 = vpop.f32.mrb[57].mxu0 }
0x10ad   : > { %v2857_v52 = vpop.f32.mrb[58].mxu0 }
0x10ae   : > { %v2862_v54 = vmul.f32 0.17677669, %v2857_v52  ;;  %v4393_v55 = vpop.f32.mrb[59].mxu0  ;;  %v2863_v56 = vsel %vm703_vm2, %v2861_v49, -inf }
0x10af   : > { %2864 = vmax.xlane.f32.xlu0 %v2863_v56 }
0x10b0   : > { %v2866_v58 = vsel %vm703_vm2, %v2862_v54, -inf }
0x10b1   : > { %2867 = vmax.xlane.f32.xlu1 %v2866_v58 }
0x10b3   : > { %2990 = vmax.xlane.f32.xlu0 %v2989_v61 }
0x10b5   : > { %3118 = vmax.xlane.f32.xlu1 %v3117_v62  ;;  %v4746_v62 = vld [vmem:[#allocation11 + $0x40] sm:$0xff]  }
0x10b6   : > { %4425 = vmatpush3.bf16.msra.mxu1 %v4746_v62 }
0x10b7   : > { %2993 = vmax.xlane.f32.xlu0 %v2992_v1  ;;  %4426 = vmatprep.subr.bf16.mxu1 %v5158_v0  ;;  %v4748_v1 = vld [vmem:[#allocation11 + $0x50] sm:$0xff]  }
0x10bb   : > { %3115 = vmax.xlane.f32.xlu0 %v3114_v3  ;;  %v4749_v3 = vld [vmem:[#allocation11 + $0x58] sm:$0xff]  }
0x113c   : > { %v2865_v4 = vpop.xlane.xlu0 %2864 }
0x113d   : > { %v2869_v15 = vsub.f32 %v2861_v49, %v2865_v4  ;;  %v4750_v4 = vld [vmem:[#allocation11 + $0x60] sm:$0xff]  }
0x113e   : > { %v2868_v5 = vpop.xlane.xlu1 %2867 }
0x113f   : > { %v2870_v16 = vsub.f32 %v2862_v54, %v2868_v5  ;;  %v2871_v19 = vmul.f32 1.442695, %v2869_v15 }
0x1140   : > { %v2991_v6 = vpop.xlane.xlu0 %2990 }
0x1141   : > { %v2995_v7 = vsub.f32 %v2987_v53, %v2991_v6  ;;  %v2873_v21 = vmul.f32 1.442695, %v2870_v16  ;;  %v4753_v16 = vld [vmem:[#allocation11 + $0x78] sm:$0xff]  }
0x1142   : > { %v3119_v8 = vpop.xlane.xlu1 %3118 }
0x1143   : > { %v2997_v10 = vmul.f32 1.442695, %v2995_v7  ;;  %v3121_v11 = vsub.f32 %v3113_v57, %v3119_v8  ;;  %v4751_v7 = vld [vmem:[#allocation11 + $0x68] sm:$0xff]  }
0x1144   : > { %v2994_v13 = vpop.xlane.xlu0 %2993 }
0x1145   : > { %4812 = vpow2.f32 %v2997_v10  ;;  %v2996_v14 = vsub.f32 %v2988_v59, %v2994_v13  ;;  %v3124_v17 = vmul.f32 1.442695, %v3121_v11  ;;  %v4752_v13 = vld [vmem:[#allocation11 + $0x70] sm:$0xff]  }
0x1147   : > { %v2999_v20 = vmul.f32 1.442695, %v2996_v14 }
0x1148   : > { %v3116_v22 = vpop.xlane.xlu0 %3115 }
0x1149   : > { %4814 = vpow2.f32 %v2999_v20  ;;  %v3120_v18 = vsub.f32 %v3112_v63, %v3116_v22  ;;  %v4747_v63 = vld [vmem:[#allocation11 + $0x48] sm:$0xff]  }
0x114a   : > { %4816 = vpow2.f32 %v3124_v17  ;;  %4427 = vmatpush3.bf16.msra.mxu1 %v4747_v63 }
0x114b   : > { %v3122_v23 = vmul.f32 1.442695, %v3120_v18  ;;  %4428 = vmatprep.subr.bf16.mxu1 %v5158_v0  ;;  %v4754_v18 = vld [vmem:[#allocation13 + $0x40] sm:$0xff]  }
0x114d   : > { %4818 = vpow2.f32 %v3122_v23 }
0x114e   : > { %4820 = vpow2.f32 %v2871_v19  ;;  %4429 = vmatpush3.bf16.msra.mxu1 %v4748_v1  ;;  %v4755_v19 = vld [vmem:[#allocation13 + $0x48] sm:$0xff]  }
0x114f   : > { %v4813_v24 = vpop.eup %4812  ;;  %4822 = vpow2.f32 %v2873_v21  ;;  %4430 = vmatprep.subr.bf16.mxu1 %v5158_v0 }
0x1150   : > { %v3001_v30 = vsel %vm703_vm2, %v4813_v24, 0.0 }
0x1151   : > { %3002 = vadd.xlane.f32.xlu0 %v3001_v30 }
0x1152   : > { %4431 = vmatpush3.bf16.msra.mxu1 %v4749_v3 }
0x1153   : > { %v4815_v25 = vpop.eup %4814  ;;  %4432 = vmatprep.subr.bf16.mxu1 %v5158_v0 }
0x1154   : > { %v3004_v26 = vsel %vm703_vm2, %v4815_v25, 0.0  ;;  %v4817_v27 = vpop.eup %4816 }
0x1155   : > { %3005 = vadd.xlane.f32.xlu1 %v3004_v26  ;;  %v3129_v32 = vsel %vm703_vm2, %v4817_v27, 0.0  ;;  %v4756_v26 = vld [vmem:[#allocation13 + $0x50] sm:$0xff]  }
0x1156   : > { %4433 = vmatpush3.bf16.msra.mxu1 %v4750_v4 }
0x1157   : > { %v4819_v28 = vpop.eup %4818  ;;  %4434 = vmatprep.subr.bf16.mxu1 %v5158_v0 }
0x1158   : > { %v4821_v29 = vpop.eup %4820  ;;  %v3126_v31 = vsel %vm703_vm2, %v4819_v28, 0.0 }
0x1159   : > { %v4823_v9 = vpop.eup %4822  ;;  %3127 = vadd.xlane.f32.xlu0 %v3126_v31  ;;  %3130 = vadd.xlane.f32.xlu1 %v3129_v32  ;;  %v2875_v12 = vsel %vm703_vm2, %v4821_v29, 0.0  ;;  %v4760_v31 = vld [vmem:[#allocation13 + $0x70] sm:$0xff]  }
0x115a   : > { %v2878_v33 = vsel %vm703_vm2, %v4823_v9, 0.0  ;;  %4435 = vmatpush3.bf16.msra.mxu1 %v4751_v7 }
0x115b   : > { %4436 = vmatprep.subr.bf16.mxu1 %v5158_v0 }
0x115d   : > { %2876 = vadd.xlane.f32.xlu0 %v2875_v12  ;;  %2879 = vadd.xlane.f32.xlu1 %v2878_v33 }
0x115e   : > { %4437 = vmatpush3.bf16.msra.mxu1 %v4752_v13 }
0x115f   : > { %4438 = vmatprep.subr.bf16.mxu1 %v5158_v0 }
0x1162   : > { %4439 = vmatpush3.bf16.msra.mxu1 %v4753_v16 }
0x1163   : > { %4464 = vmatprep.subr.bf16.mxu1 %v5158_v0 }
0x116e   : > { %3012 = vrot.lane.b32.xlu1 %v5891_v2, %s5162_s23 }
0x1172   : > { %3137 = vrot.lane.b32.xlu1 %v5891_v2, %s5161_s30 }
0x1173   : > { %2887 = vrot.lane.b32.xlu0 %v5891_v2, %s5160_s20 }
0x11de   : > { %v3003_v34 = vpop.xlane.xlu0 %3002 }
0x11e2   : > { %v3006_v35 = vpop.xlane.xlu1 %3005 }
0x11e6   : > { %v3128_v51 = vpop.xlane.xlu0 %3127  ;;  %v3131_v36 = vpop.xlane.xlu1 %3130 }
0x11ea   : > { %v2877_v37 = vpop.xlane.xlu0 %2876  ;;  %v2880_v38 = vpop.xlane.xlu1 %2879 }
0x11eb   : > { %4824 = vrcp.f32 %v2877_v37 }
0x11ec   : > { %4826 = vrcp.f32 %v2880_v38 }
0x11ed   : > { %4828 = vrcp.f32 %v3006_v35 }
0x11ee   : > { %v2888_v39 = vpop.permute.xlu0 %2887  ;;  %4830 = vrcp.f32 %v3003_v34  ;;  %v3013_v60 = vpop.permute.xlu1 %3012 }
0x11ef   : > { %v2893_v40 = vsel %vm707_vm1, %v2888_v39, 0  ;;  %4832 = vrcp.f32 %v3128_v51  ;;  %v3018_v48 = vsel %vm707_vm1, %v3013_v60, 0  ;;  %v4761_v60 = vld [vmem:[#allocation13 + $0x78] sm:$0xff]  }
0x11f0   : > { %4395 = vmatpush3.bf16.msra.mxu0 %v2893_v40  ;;  %4834 = vrcp.f32 %v3131_v36 }
0x11f1   : > { %4406 = vmatprep.subr.bf16.mxu0 %v5158_v0 }
0x11f2   : > { %v3138_v53 = vpop.permute.xlu1 %3137 }
0x11f3   : > { %v3143_v57 = vsel %vm707_vm1, %v3138_v53, 0 }
0x11f5   : > { %v4825_v41 = vpop.eup %4824 }
0x11f6   : > { %v4827_v43 = vpop.eup %4826  ;;  %v2883_v45 = vmul.f32 %v4825_v41, %v4821_v29  ;;  %v4759_v29 = vld [vmem:[#allocation13 + $0x68] sm:$0xff]  }
0x11f7   : > { %v2884_v2 = vmul.f32 %v4827_v43, %v4823_v9  ;;  %v4829_v47 = vpop.eup %4828 }
0x11f8   : > { %v4831_v49 = vpop.eup %4830  ;;  %v3010_v50 = vmul.f32 %v4829_v47, %v4815_v25 }
0x11f9   : > { %v2885_v46 = vpack.c.bf16 %v2884_v2, %v2883_v45  ;;  %v3009_v52 = vmul.f32 %v4831_v49, %v4813_v24  ;;  %v4833_v54 = vpop.eup %4832 }
0x11fa   : > { %v4835_v56 = vpop.eup %4834  ;;  %v3134_v58 = vmul.f32 %v4833_v54, %v4819_v28  ;;  %v4758_v28 = vld [vmem:[#allocation13 + $0x60] sm:$0xff]  }
0x11fb   : > { %4397 = vmatmul.mubr.msk.bf16.vlgmr.msra.gmra.mrb[60].mxu0 %vm703_vm2, %v2885_v46  ;;  %v3011_v55 = vpack.c.bf16 %v3010_v50, %v3009_v52  ;;  %v3135_v59 = vmul.f32 %v4835_v56, %v4817_v27  ;;  %v4757_v27 = vld [vmem:[#allocation13 + $0x58] sm:$0xff]  }
0x11fc   : > { %4407 = vmatpush3.bf16.msra.mxu0 %v3018_v48  ;;  %4408 = vmatprep.mubr.msk.bf16.mxu0 %vm5159_vm0, %v5158_v0 }
0x11fd   : > { %4418 = vmatprep.subr.bf16.mxu0 %v5158_v0  ;;  %v3136_v61 = vpack.c.bf16 %v3135_v59, %v3134_v58  ;;  %v3834_v58 = vld [vmem:[%s6135_s6 + $0x1] ss:$0 sm:$0xff] }
0x1203   : > { %4409 = vmatmul.mubr.msk.bf16.vlgmr.msra.gmra.mrb[64].mxu0 %vm703_vm2, %v3011_v55 }
0x1204   : > { %4419 = vmatpush3.bf16.msra.mxu0 %v3143_v57  ;;  %4420 = vmatprep.mubr.msk.bf16.mxu0 %vm5159_vm0, %v5158_v0 }
0x1205   : > { %4444 = vmatprep.subr.bf16.mxu0 %v5158_v0 }
0x120b   : > { %4421 = vmatmul.mubr.msk.bf16.vlgmr.msra.gmra.mrb[68].mxu0 %vm703_vm2, %v3136_v61 }
0x120c   : > { %4460 = vmatprep.mubr.msk.bf16.mxu0 %vm5159_vm0, %v5158_v0  ;;  %4445 = vmatpush3.bf16.msra.mxu0 %v4754_v18 }
0x120d   : > { %4446 = vmatprep.subr.bf16.mxu0 %v5158_v0 }
0x1210   : > { %4447 = vmatpush3.bf16.msra.mxu0 %v4755_v19 }
0x1211   : > { %4448 = vmatprep.subr.bf16.mxu0 %v5158_v0 }
0x1214   : > { %4449 = vmatpush3.bf16.msra.mxu0 %v4756_v26 }
0x1215   : > { %4450 = vmatprep.subr.bf16.mxu0 %v5158_v0 }
0x1218   : > { %4451 = vmatpush3.bf16.msra.mxu0 %v4757_v27 }
0x1219   : > { %4452 = vmatprep.subr.bf16.mxu0 %v5158_v0 }
0x121c   : > { %4453 = vmatpush3.bf16.msra.mxu0 %v4758_v28 }
0x121d   : > { %4454 = vmatprep.subr.bf16.mxu0 %v5158_v0 }
0x1220   : > { %4455 = vmatpush3.bf16.msra.mxu0 %v4759_v29 }
0x1221   : > { %4456 = vmatprep.subr.bf16.mxu0 %v5158_v0 }
0x1224   : > { %4457 = vmatpush3.bf16.msra.mxu0 %v4760_v31 }
0x1225   : > { %4458 = vmatprep.subr.bf16.mxu0 %v5158_v0 }
0x1228   : > { %4459 = vmatpush3.bf16.msra.mxu0 %v4761_v60 }
0x12ce   : > { %v2929_v5 = vpop.f32.mrb[60].mxu0 }
0x12cf   : > { %v4398_v6 = vpop.f32.mrb[61].mxu0 }
0x12d0   : > { %v2932_v8 = vpop.f32.mrb[62].mxu0 }
0x12d1   : > { %v4635_v10 = vpack.i.bf16 %v2932_v8, %v2929_v5  ;;  %v4399_v11 = vpop.f32.mrb[63].mxu0 }
0x12d3   : > { %4636 = vrot.lane.b32.xlu1 %v4635_v10, %s5161_s30  ;;  %s3892_s30 = sshll.u32 %s5275_s0, 4  ;;  %s3551_s0 = scalar_lea.sflag [#allocation4], %s5541_s2 }
0x12d4   : > { %s6034_s16 = scalar_lea.hbm %s6138_s5, %s3892_s30 }
0x12d6   : > { %v3054_v14 = vpop.f32.mrb[64].mxu0 }
0x12d7   : > { %v4410_v15 = vpop.f32.mrb[65].mxu0 }
0x12d8   : > { %v3057_v17 = vpop.f32.mrb[66].mxu0 }
0x12d9   : > { %v4640_v20 = vpack.i.bf16 %v3057_v17, %v3054_v14  ;;  %v4411_v22 = vpop.f32.mrb[67].mxu0 }
0x12db   : > { %4641 = vrot.lane.b32.xlu0 %v4640_v20, %s5162_s23  ;;  %s6136_s23 = sld [smem:[#allocation30_spill]] }
0x12de   : > { %v3179_v21 = vpop.f32.mrb[68].mxu0 }
0x12df   : > { %v4422_v23 = vpop.f32.mrb[69].mxu0 }
0x12e0   : > { %v3182_v24 = vpop.f32.mrb[70].mxu0 }
0x12e1   : > { %v4645_v30 = vpack.i.bf16 %v3182_v24, %v3179_v21  ;;  %v4423_v25 = vpop.f32.mrb[71].mxu0  ;;  %v4764_v52 = vld [vmem:[%s6136_s23 + $0x10] sm:$0xff]   ;;  %v4765_v53 = vld [vmem:[%s6136_s23 + $0x18] sm:$0xff]   ;;  %v4766_v54 = vld [vmem:[%s6136_s23 + $0x20] sm:$0xff]  }
0x12e2   : > { %v4767_v55 = vld [vmem:[%s6136_s23 + $0x28] sm:$0xff]   ;;  %v4768_v56 = vld [vmem:[%s6136_s23 + $0x30] sm:$0xff]   ;;  %v4769_v57 = vld [vmem:[%s6136_s23 + $0x38] sm:$0xff]  }
0x12e3   : > { %4646 = vrot.lane.b32.xlu1 %v4645_v30, %s5160_s20  ;;  %s6137_s20 = sld [smem:[#allocation31_spill]] }
0x12e9   : > { %v3459_v16 = vld [vmem:[%s6137_s20] sm:$0x1]  ;;  %s5066_s20 = sshll.u32 %s5163_s28, 4  ;;  %s5067_s20 = int_to_ptr.vmem [resolvable:$false] %s5066_s20 }
0x12ea   : > { %s5068_s21 = scalar_lea.vmem %s5067_s20, 32  ;;  %p5069_p7 = scmp.lt.s32.totalorder %s6036_s1, %s5067_s20 }
0x12eb   : > { %p5070_p5 = scmp.lt.s32.totalorder %s5068_s21, %s5062_s15 }
0x12ed   : > { %p5071_p10 = por %p5070_p5, %p5069_p7 }
0x12ef   : > { %p5072_p11 = pnand %p5071_p10, %p5065_p2 }
0x1345   : > { %v4637_v32 = vpop.permute.xlu1 %4636 }
0x1346   : > { %v4639_v12 = vunpack.i.h.bf16 %v4637_v32  ;;  %v4638_v33 = vunpack.i.l.bf16 %v4637_v32 }
0x1348   : > { %v3211_v36 = vsel %vm1346_vm4, %v5929_v44, %v4639_v12  ;;  %v3210_v37 = vsel %vm1346_vm4, %v5927_v42, %v4638_v33  ;;  %v4762_v42 = vld [vmem:[%s6136_s23] sm:$0xff]   ;;  %v4763_v44 = vld [vmem:[%s6136_s23 + $0x8] sm:$0xff]  }
0x134d   : > { %v4642_v9 = vpop.permute.xlu0 %4641 }
0x134e   : > { %v4644_v34 = vunpack.i.h.bf16 %v4642_v9  ;;  %v4643_v35 = vunpack.i.l.bf16 %v4642_v9 }
0x1350   : > { %v3213_v40 = vsel %vm1870_vm5, %v3211_v36, %v4644_v34  ;;  %v3212_v41 = vsel %vm1870_vm5, %v3210_v37, %v4643_v35 }
0x1355   : > { %v4647_v51 = vpop.permute.xlu1 %4646 }
0x1356   : > { %v4649_v38 = vunpack.i.h.bf16 %v4647_v51  ;;  %v4648_v39 = vunpack.i.l.bf16 %v4647_v51 }
0x1358   : > { %v3215_v43 = vsel %vm1873_vm6, %v3213_v40, %v4649_v38  ;;  %v3214_v45 = vsel %vm1873_vm6, %v3212_v41, %v4648_v39 }
0x1359   : > { %v3233_v2 = vpack.c.bf16 %v3215_v43, %v3214_v45 }
0x135b   : > { %4441 = vmatmul.mubr.bf16.vlgmr.msra.gmra.mrb[52].mxu1 %v3233_v2 }
0x135c   : > { %4480 = vmatprep.mubr.msk.bf16.mxu1 %vm5159_vm0, %v5158_v0  ;;  %4465 = vmatpush3.bf16.msra.mxu1 %v4762_v42 }
0x135d   : > { %4466 = vmatprep.subr.bf16.mxu1 %v5158_v0 }
0x1360   : > { %4467 = vmatpush3.bf16.msra.mxu1 %v4763_v44 }
0x1361   : > { %4468 = vmatprep.subr.bf16.mxu1 %v5158_v0 }
0x1364   : > { %4469 = vmatpush3.bf16.msra.mxu1 %v4764_v52 }
0x1365   : > { %4470 = vmatprep.subr.bf16.mxu1 %v5158_v0 }
0x1368   : > { %4471 = vmatpush3.bf16.msra.mxu1 %v4765_v53 }
0x1369   : > { %4472 = vmatprep.subr.bf16.mxu1 %v5158_v0 }
0x136c   : > { %4473 = vmatpush3.bf16.msra.mxu1 %v4766_v54 }
0x136d   : > { %4474 = vmatprep.subr.bf16.mxu1 %v5158_v0 }
0x1370   : > { %4475 = vmatpush3.bf16.msra.mxu1 %v4767_v55 }
0x1371   : > { %4476 = vmatprep.subr.bf16.mxu1 %v5158_v0 }
0x1374   : > { %4477 = vmatpush3.bf16.msra.mxu1 %v4768_v56 }
0x1375   : > { %4478 = vmatprep.subr.bf16.mxu1 %v5158_v0 }
0x1378   : > { %4479 = vmatpush3.bf16.msra.mxu1 %v4769_v57 }
0x142e   : > { %v3316_v46 = vpop.f32.mrb[52].mxu1 }
0x142f   : > { %v4442_v47 = vpop.f32.mrb[53].mxu1 }
0x1430   : > { %v3319_v48 = vpop.f32.mrb[54].mxu1 }
0x1431   : > { %v3340_v49 = vpack.c.bf16 %v3319_v48, %v3316_v46  ;;  %v4443_v50 = vpop.f32.mrb[55].mxu1 }
0x1433   : > { %4461 = vmatmul.mubr.bf16.vlgmr.msra.gmra.mrb[40].mxu0 %v3340_v49 }
0x1506   : > { %v3423_v59 = vpop.f32.mrb[40].mxu0 }
0x1507   : > { %v4488_v61 = vadd.f32 %v3834_v58, %v3423_v59  ;;  %v4462_v62 = vpop.f32.mrb[41].mxu0 }
0x1508   : > { %v3426_v63 = vpop.f32.mrb[42].mxu0 }
0x1509   : > { %v4489_v1 = vadd.f32 %v3834_v58, %v3426_v63  ;;  %v4463_v3 = vpop.f32.mrb[43].mxu0  ;;  %v3432_v4 = vmax.f32 %v4488_v61, 0.0 }
0x150b   : > { %v3433_v5 = vmax.f32 %v4489_v1, 0.0 }
0x150d   : > { %v3434_v6 = vadd.f32 %v3433_v5, %v3432_v4 }
0x150f   : > { %v3435_v7 = vrot.slane %v3434_v6, 4 }
0x1511   : > { %v3436_v8 = vadd.f32 %v3435_v7, %v3434_v6 }
0x1513   : > { %v3437_v10 = vrot.slane %v3436_v8, 2 }
0x1515   : > { %v3438_v0 = vadd.f32 %v3437_v10, %v3436_v8 }
0x1517   : > { %v3439_v11 = vrot.slane %v3438_v0, 1 }
0x1519   : > { %v3440_v13 = vadd.f32 %v3439_v11, %v3438_v0 }
0x151b   : > { %v3441_v14 = vmul.f32 0.0625, %v3440_v13 }
0x151d   : > { %v3458_v15 = vpack.c.bf16 %v3441_v14, %v3441_v14 }
0x151f   : > { %4481 = vmatmul.mubr.bf16.vlgmr.msra.gmra.mrb[56].mxu1 %v3458_v15 }
0x15f2   : > { %v3542_v17 = vpop.f32.mrb[56].mxu1 }
0x15f3   : > { %v3543_v20 = vadd.f32 %v3542_v17, %v3459_v16  ;;  %v4482_v22 = vpop.f32.mrb[57].mxu1 }
0x15f4   : > { %v3545_v18 = vpop.f32.mrb[58].mxu1 }
0x15f5   : > { %v4483_v19 = vpop.f32.mrb[59].mxu1  ;;  %3549 = vst.msk [vmem:[%s682_s22] sm:$0x1] %vm3548_vm7, %v3543_v20 }
0x15f6   : > { %5075 = shalt.err (!%p5072_p11)
}
0x15f7   : > { %s5076_s2 = scalar_lea.hbm %s6034_s16, 16  ;;  %s5080_s19 = scalar_lea.hbm %s6138_s5, 64 }
0x15f8   : > { %p5077_p3 = scmp.ne.s32.totalorder %s6034_s16, %s5076_s2  ;;  %p5081_p6 = scmp.lt.u32.totalorder %s6034_s16, %s6138_s5 }
0x15f9   : > { %p5082_p9 = scmp.lt.u32.totalorder %s5080_s19, %s5076_s2  ;;  %p5084_p1 = scmp.lt.u32.totalorder %s5076_s2, %s6034_s16 }
0x15fa   : > { %p5078_p4 = pnand %p5077_p3, %p6139_p13 }
0x15fb   : > { %p5083_p12 = por %p5082_p9, %p5081_p6 }
0x15fc   : > { %p5079_p8 = pneg %p5078_p4 }
0x15fd   : > { %p5085_p0 = por %p5084_p1, %p5083_p12 }
0x15ff   : > { %p5086_p2 = pnand %p5085_p0, %p5079_p8 }
0x1601   : > { %5089 = shalt.err (!%p5086_p2)
}
0x1602   : > { %4524 = dma.vmem_to_hbm [thread:$0]  (%p6139_p13), %s6036_s1, 16, %s6034_s16, %s3551_s0  }
0x1603 PF: > { %p4571_p7 = scmp.ge.s32.totalorder %s5144_s27, 2  ;;  %s3575_s15 = sand.u32 1, %s5132_s24  }
0x1604   : > { %p6140_p5 = scmp.ne.s32.totalorder %s6119_s8, 0  ;;  %s3576_s21 = scalar_lea.sflag [#allocation4], %s3575_s15 }
0x1606   : > { %p4553_p10 = pnand %p4571_p7, %p6140_p5 }
0x1608   : > { %5127 = dma.done.wait (!%p4553_p10), %s3576_s21, 16  }
0x1609   : > { %5129 = vsyncadd (!%p4553_p10), %s3576_s21, 4294967280  ;;  %p34_p11 = scmp.ge.s32.totalorder %s5468_s18, 6   ;;  %s6141_s24 = smov %s5136_s25 }
0x160a   : > { %s6142_s25 = smov %s5140_s26  ;;  %s6143_s26 = smov %s5480_s4 }
0x160b   : > { %s6144_s27 = smov %s5468_s18  ;;  %36 = sbr.rel (!%p34_p11) target bundleno = 20 (0x14), region = 171 }
0x1612   :  { %3580 = vsyncpa [#allocation3], 1 }
0x1613   :  { %3582 = vsyncpa [#allocation3 + $0x1], 1 }
0x1614   :  { %3583 = vsyncpa [#allocation6], 1 }
0x1615   :  { %3584 = vsyncpa [#allocation9], 1 }
0x1616   :  { %3585 = vsyncpa [#allocation12], 1 }
0x1617   :  { %3586 = vsyncpa [#allocation15], 1 }
0x1618   :  { %3587 = vsyncpa [#allocation4], 1 }
0x1619   :  { %3589 = vsyncpa [#allocation4 + $0x1], 1 }

</bundles_post_ra>
